<compile_context>
chip_gen: v7x
topology: tpu7x:2x2x1
jax: 0.10.0
libtpu: 0.0.40
codegen_flags: <defaults>
</compile_context>

<pallas_src>
import functools

import numpy as np

import jax
import jax.numpy as jnp
from jax import lax
from jax.experimental import pallas as pl
from jax.experimental.pallas import tpu as pltpu


# ----------------------------------------------------------------------------
# Pallas kernel (channel-on-sublane / pixel-on-lane layout)
# ----------------------------------------------------------------------------
def _residual_block_kernel(*refs, K, identity):
    if identity:
        x_ref, w1_ref, b1_ref, w2_ref, bo_ref, out_ref = refs
        ws_ref = None
    else:
        x_ref, w1_ref, b1_ref, w2_ref, ws_ref, bo_ref, out_ref = refs

    p = (K - 1) // 2
    cin2, THp, Wp = x_ref.shape            # halo tile: (2Cin, TH+2p, W+2p)
    TH, W = THp - 2 * p, Wp - 2 * p

    x = x_ref[...]                         # VMEM resident activation tile

    # --- im2col slab: K*K shifted slices stacked along the reduction dim ----
    taps = [x[:, dy:dy + TH, dx:dx + W].reshape(cin2, TH * W)
            for dy in range(K) for dx in range(K)]
    slab = jnp.concatenate(taps, axis=0)   # (K*K*2Cin, TH*W)

    # --- complexConv2d #1 (KxK circular): ONE MXU dot, f32 accumulation -----
    h = jnp.dot(w1_ref[...], slab, preferred_element_type=jnp.float32)
    # bias packed as [br - bi ; br + bi]; complexReLU == relu on packed rows
    h = jnp.maximum(h + b1_ref[...], 0.0)  # (2Cout, TH*W), lane-dense

    # --- complexConv2d #2 (1x1) + combined bias + shortcut -------------------
    y = jnp.dot(w2_ref[...], h, preferred_element_type=jnp.float32) + bo_ref[...]
    x_int = x[:, p:p + TH, p:p + W].reshape(cin2, TH * W)
    if identity:                           # Cin == Cout: plain residual add
        y = y + x_int.astype(jnp.float32)
    else:
        y = y + jnp.dot(ws_ref[...], x_int, preferred_element_type=jnp.float32)

    # --- final complexReLU, unmasked lane-dense store ------------------------
    out_ref[...] = jnp.maximum(y, 0.0).astype(out_ref.dtype)


# ----------------------------------------------------------------------------
# Packing helpers
# ----------------------------------------------------------------------------
def _pack_cmat(wr, wi, dtype):
    # [yr ; yi] = [[Wr, -Wi], [Wi, Wr]] @ [xr ; xi]
    top = jnp.concatenate([wr, -wi], axis=1)
    bot = jnp.concatenate([wi, wr], axis=1)
    return jnp.concatenate([top, bot], axis=0).astype(dtype)


def _pack_cbias(br, bi):
    # complexConv2d bias semantics: real gets (br - bi), imag gets (br + bi)
    return jnp.concatenate([br - bi, br + bi]).reshape(-1, 1).astype(jnp.float32)


def _select_row_tile(H, W, cin2, cout2, K, row_tile, in_itemsize, n_batch,
                     vmem_budget=40 * 1024 * 1024):
    """Largest divisor of H keeping the output block lane-dense
    (TH*W % 128 == 0, or whole image) and the working set inside a VMEM
    budget sized for v7x's 64 MiB physical VMEM (fine on v5e/v6e)."""
    p = (K - 1) // 2

    def tile_bytes(th):
        thp, wp = th + 2 * p, W + 2 * p
        b = 2 * thp * wp * cin2 * in_itemsize        # double-buffered input
        b += 2 * th * W * cout2 * 4                  # double-buffered f32 output
        b += th * W * K * K * cin2 * in_itemsize     # im2col slab
        b += 3 * th * W * cout2 * 4                  # h / y / relu temporaries
        return b

    divisors = [d for d in range(1, H + 1) if H % d == 0]
    legal = [d for d in divisors if (d * W) % 128 == 0 or d == H]
    fitting = [d for d in legal if tile_bytes(d) <= vmem_budget]
    if not fitting:
        return min(legal)
    cands = [d for d in fitting if d <= row_tile] or fitting
    th = max(cands)
    # v7x has two TensorCores: keep the grid >= 2 for single-image calls.
    if n_batch == 1 and th == H:
        smaller = [d for d in fitting if d < H]
        if smaller:
            th = max(smaller)
    return th


# ----------------------------------------------------------------------------
# Wrapper
# ----------------------------------------------------------------------------
def residual_block_pallas(x, params, kernel_size=3, row_tile=256,
                          compute_dtype=jnp.bfloat16):
    """x: complex64 NCHW. Returns complex64 NCHW."""
    N, Cin, H, W = x.shape
    K = kernel_size
    p = (K - 1) // 2
    Cout = params["conv1_r_w"].shape[0]
    identity = "short_r_w" not in params
    if identity and Cin != Cout:
        raise ValueError("identity shortcut requires Cin == Cout")
    cin2, cout2 = 2 * Cin, 2 * Cout

    in_itemsize = jnp.dtype(compute_dtype).itemsize
    TH = _select_row_tile(H, W, cin2, cout2, K, row_tile, in_itemsize, N)
    nH = H // TH
    THp, Wp = TH + 2 * p, W + 2 * p

    # activations: NCHW complex -> channel-major packed [real ; imag]
    xp = jnp.concatenate([jnp.real(x), jnp.imag(x)], axis=1).astype(compute_dtype)

    # Circular halo: one gather builds the overlapping (THp, Wp) windows with
    # wrapped rows/cols directly from the un-padded activation (replaces the
    # previous wrap-pad + halo-gather + transpose HBM passes).
    ridx = (np.arange(nH)[:, None] * TH + np.arange(THp)[None, :] - p) % H
    cidx = (np.arange(Wp) - p) % W
    xt = xp[:, :, ridx[:, :, None], cidx[None, None, :]]   # (N, 2Cin, nH, THp, Wp)

    # packed weights / combined biases (conv1 taps fused along the reduction dim)
    w1r, w1i = params["conv1_r_w"], params["conv1_i_w"]          # (O, I, K, K)
    w1 = jnp.concatenate(
        [_pack_cmat(w1r[:, :, dy, dx], w1i[:, :, dy, dx], compute_dtype)
         for dy in range(K) for dx in range(K)], axis=1)         # (2Cout, K*K*2Cin)
    b1 = _pack_cbias(params["conv1_r_b"], params["conv1_i_b"])   # (2Cout, 1)
    # w2 stays f32 so the f32 `h` feeds the MXU with no extra cast pass.
    w2 = _pack_cmat(params["conv2_r_w"][:, :, 0, 0],
                    params["conv2_i_w"][:, :, 0, 0], jnp.float32)
    bo = _pack_cbias(params["conv2_r_b"], params["conv2_i_b"])
    if not identity:
        ws = _pack_cmat(params["short_r_w"][:, :, 0, 0],
                        params["short_i_w"][:, :, 0, 0], compute_dtype)
        bo = bo + _pack_cbias(params["short_r_b"], params["short_i_b"])

    def full_spec(a):
        nd = a.ndim
        return pl.BlockSpec(a.shape, lambda n, t, _nd=nd: (0,) * _nd)

    in_arrays = [xt, w1, b1, w2]
    in_specs = [pl.BlockSpec((None, cin2, None, THp, Wp),
                             lambda n, t: (n, 0, t, 0, 0)),
                full_spec(w1), full_spec(b1), full_spec(w2)]
    if not identity:
        in_arrays.append(ws)
        in_specs.append(full_spec(ws))
    in_arrays.append(bo)
    in_specs.append(full_spec(bo))

    flops = 2 * N * H * W * cout2 * (K * K * cin2 + cout2
                                     + (0 if identity else cin2))
    bytes_accessed = int(sum(int(a.size) * a.dtype.itemsize for a in in_arrays)
                         + N * cout2 * H * W * 4)

    kernel = functools.partial(_residual_block_kernel, K=K, identity=identity)

    out = pl.pallas_call(
        kernel,
        out_shape=jax.ShapeDtypeStruct((N, cout2, H * W), jnp.float32),
        grid=(N, nH),
        in_specs=in_specs,
        out_specs=pl.BlockSpec((None, cout2, TH * W), lambda n, t: (n, 0, t)),
        compiler_params=pltpu.CompilerParams(
            dimension_semantics=("parallel", "parallel"),
            vmem_limit_bytes=48 * 1024 * 1024),
        cost_estimate=pl.CostEstimate(flops=flops, transcendentals=0,
                                      bytes_accessed=bytes_accessed),
    )(*in_arrays)

    # output is already channel-major: just reshape and rebuild complex NCHW
    out = out.reshape(N, cout2, H, W)
    return (out[:, :Cout] + 1j * out[:, Cout:]).astype(jnp.complex64)


# ----------------------------------------------------------------------------
# Deterministic parameter init (shapes follow the PyTorch module __init__)
# ----------------------------------------------------------------------------
def init_params(key, cin, cout, k):
    def conv_init(kk, o, i, kh, kw):
        kw_, kb_ = jax.random.split(kk)
        bound = 1.0 / float((i * kh * kw) ** 0.5)
        w = jax.random.uniform(kw_, (o, i, kh, kw), jnp.float32, -bound, bound)
        b = jax.random.uniform(kb_, (o,), jnp.float32, -bound, bound)
        return w, b

    keys = jax.random.split(key, 6)
    params = {}
    params["conv1_r_w"], params["conv1_r_b"] = conv_init(keys[0], cout, cin, k, k)
    params["conv1_i_w"], params["conv1_i_b"] = conv_init(keys[1], cout, cin, k, k)
    params["conv2_r_w"], params["conv2_r_b"] = conv_init(keys[2], cout, cout, 1, 1)
    params["conv2_i_w"], params["conv2_i_b"] = conv_init(keys[3], cout, cout, 1, 1)
    if cin != cout:
        params["short_r_w"], params["short_r_b"] = conv_init(keys[4], cout, cin, 1, 1)
        params["short_i_w"], params["short_i_b"] = conv_init(keys[5], cout, cin, 1, 1)
    return params


# ----------------------------------------------------------------------------
# Pure-JAX reference (mirrors the PyTorch forward) for a correctness check
# ----------------------------------------------------------------------------
def _conv2d_ref(x, w, b, padding, mode):
    if padding > 0 and mode == "circular":
        x = jnp.pad(x, ((0, 0), (0, 0), (padding, padding), (padding, padding)),
                    mode="wrap")
        pads = [(0, 0), (0, 0)]
    else:
        pads = [(padding, padding), (padding, padding)]
    y = lax.conv_general_dilated(x, w, window_strides=(1, 1), padding=pads,
                                 dimension_numbers=("NCHW", "OIHW", "NCHW"))
    return y + b[None, :, None, None]


def _complex_conv_ref(x, wr, br, wi, bi, padding, mode):
    xr, xi = jnp.real(x), jnp.imag(x)
    rr = _conv2d_ref(xr, wr, br, padding, mode)
    ii = _conv2d_ref(xi, wi, bi, padding, mode)
    ri = _conv2d_ref(xi, wr, br, padding, mode)
    ir = _conv2d_ref(xr, wi, bi, padding, mode)
    return (rr - ii).astype(jnp.complex64) + 1j * (ri + ir).astype(jnp.complex64)


def _crelu(z):
    return (jnp.maximum(jnp.real(z), 0.0).astype(jnp.complex64)
            + 1j * jnp.maximum(jnp.imag(z), 0.0).astype(jnp.complex64))


def residual_block_ref(x, params, k):
    p = (k - 1) // 2
    h = _crelu(_complex_conv_ref(x, params["conv1_r_w"], params["conv1_r_b"],
                                 params["conv1_i_w"], params["conv1_i_b"],
                                 p, "circular"))
    y = _complex_conv_ref(h, params["conv2_r_w"], params["conv2_r_b"],
                          params["conv2_i_w"], params["conv2_i_b"], 0, "zeros")
    if "short_r_w" in params:
        s = _complex_conv_ref(x, params["short_r_w"], params["short_r_b"],
                              params["short_i_w"], params["short_i_b"], 0, "zeros")
    else:
        s = x
    return _crelu(y + s)


if __name__ == "__main__":
    key = jax.random.PRNGKey(0)
    k1, k2 = jax.random.split(key)

    # (N, Cin, Cout, H, W, K, row_tile, key)
    cases = [
        (2, 4, 8, 16, 16, 3, 128, k1),   # projection shortcut, 1 row tile/img
        (1, 8, 8, 32, 32, 3, 16, k2),    # identity shortcut, 2 row tiles/img
    ]

    for (N, Cin, Cout, H, W, K, row_tile, kk) in cases:
        kx_r, kx_i, kp = jax.random.split(kk, 3)
        x = (jax.random.normal(kx_r, (N, Cin, H, W), jnp.float32)
             + 1j * jax.random.normal(kx_i, (N, Cin, H, W), jnp.float32)
             ).astype(jnp.complex64)
        params = init_params(kp, Cin, Cout, K)

        ref = residual_block_ref(x, params, K)
        scale = max(1.0, float(jnp.max(jnp.abs(ref))))

        # f32 streaming path: tight algorithmic check
        out32 = jax.block_until_ready(
            residual_block_pallas(x, params, kernel_size=K, row_tile=row_tile,
                                  compute_dtype=jnp.float32))
        assert out32.shape == (N, Cout, H, W) and out32.dtype == jnp.complex64
        err32 = float(jnp.max(jnp.abs(out32 - ref)))
        if not (err32 < 5e-3 * scale):
            raise AssertionError(f"f32 mismatch vs reference: {err32}")

        # bf16 streaming path (production config): loose check
        # NOTE: identity residual uses the bf16-cast activation (loose tol).
        out16 = jax.block_until_ready(
            residual_block_pallas(x, params, kernel_size=K, row_tile=row_tile,
                                  compute_dtype=jnp.bfloat16))
        assert out16.shape == (N, Cout, H, W) and out16.dtype == jnp.complex64
        err16 = float(jnp.max(jnp.abs(out16 - ref)))
        if not (err16 < 5e-2 * scale):
            raise AssertionError(f"bf16 mismatch vs reference: {err16}")

    print("KERNEL_OK")
</pallas_src>

<mosaic_0001>
module attributes {stable_mosaic.version = 11 : i64} {
  func.func @_residual_block_kernel(%arg0: i32, %arg1: i32, %arg2: memref<1x8x1x18x18xf32, #tpu.memory_space<vmem>>, %arg3: memref<16x72xf32, #tpu.memory_space<vmem>>, %arg4: memref<16x1xf32, #tpu.memory_space<vmem>>, %arg5: memref<16x16xf32, #tpu.memory_space<vmem>>, %arg6: memref<16x8xf32, #tpu.memory_space<vmem>>, %arg7: memref<16x1xf32, #tpu.memory_space<vmem>>, %arg8: memref<1x16x256xf32, #tpu.memory_space<vmem>>) attributes {dimension_semantics = [#tpu.dimension_semantics<parallel>, #tpu.dimension_semantics<parallel>], iteration_bounds = array<i64: 2, 1>, scalar_prefetch = 0 : i64, scratch_operands = 0 : i64, tpu.core_type = #tpu.core_type<tc>, window_params = [{transform_indices = @transform_0, window_bounds = array<i64: 1, 8, 1, 18, 18>}, {pipeline_mode = #tpu.pipeline_mode<synchronous>, transform_indices = @transform_1, window_bounds = array<i64: 16, 72>}, {pipeline_mode = #tpu.pipeline_mode<synchronous>, transform_indices = @transform_2, window_bounds = array<i64: 16, 1>}, {pipeline_mode = #tpu.pipeline_mode<synchronous>, transform_indices = @transform_3, window_bounds = array<i64: 16, 16>}, {pipeline_mode = #tpu.pipeline_mode<synchronous>, transform_indices = @transform_4, window_bounds = array<i64: 16, 8>}, {pipeline_mode = #tpu.pipeline_mode<synchronous>, transform_indices = @transform_5, window_bounds = array<i64: 16, 1>}, {transform_indices = @transform_6, window_bounds = array<i64: 1, 16, 256>}]} {
    %c0 = arith.constant 0 : index
    %c0_0 = arith.constant 0 : index
    %c0_1 = arith.constant 0 : index
    %c0_2 = arith.constant 0 : index
    %c0_3 = arith.constant 0 : index
    %0 = vector.load %arg2[%c0, %c0_0, %c0_1, %c0_2, %c0_3] : memref<1x8x1x18x18xf32, #tpu.memory_space<vmem>>, vector<1x8x1x18x18xf32>
    %1 = vector.shape_cast %0 : vector<1x8x1x18x18xf32> to vector<8x18x18xf32>
    %2 = vector.extract_strided_slice %1 {offsets = [0, 0, 0], sizes = [8, 16, 16], strides = [1, 1, 1]} : vector<8x18x18xf32> to vector<8x16x16xf32>
    %3 = vector.shape_cast %2 : vector<8x16x16xf32> to vector<8x256xf32>
    %4 = vector.extract_strided_slice %1 {offsets = [0, 0, 1], sizes = [8, 16, 16], strides = [1, 1, 1]} : vector<8x18x18xf32> to vector<8x16x16xf32>
    %5 = vector.shape_cast %4 : vector<8x16x16xf32> to vector<8x256xf32>
    %6 = vector.extract_strided_slice %1 {offsets = [0, 0, 2], sizes = [8, 16, 16], strides = [1, 1, 1]} : vector<8x18x18xf32> to vector<8x16x16xf32>
    %7 = vector.shape_cast %6 : vector<8x16x16xf32> to vector<8x256xf32>
    %8 = vector.extract_strided_slice %1 {offsets = [0, 1, 0], sizes = [8, 16, 16], strides = [1, 1, 1]} : vector<8x18x18xf32> to vector<8x16x16xf32>
    %9 = vector.shape_cast %8 : vector<8x16x16xf32> to vector<8x256xf32>
    %10 = vector.extract_strided_slice %1 {offsets = [0, 1, 1], sizes = [8, 16, 16], strides = [1, 1, 1]} : vector<8x18x18xf32> to vector<8x16x16xf32>
    %11 = vector.shape_cast %10 : vector<8x16x16xf32> to vector<8x256xf32>
    %12 = vector.extract_strided_slice %1 {offsets = [0, 1, 2], sizes = [8, 16, 16], strides = [1, 1, 1]} : vector<8x18x18xf32> to vector<8x16x16xf32>
    %13 = vector.shape_cast %12 : vector<8x16x16xf32> to vector<8x256xf32>
    %14 = vector.extract_strided_slice %1 {offsets = [0, 2, 0], sizes = [8, 16, 16], strides = [1, 1, 1]} : vector<8x18x18xf32> to vector<8x16x16xf32>
    %15 = vector.shape_cast %14 : vector<8x16x16xf32> to vector<8x256xf32>
    %16 = vector.extract_strided_slice %1 {offsets = [0, 2, 1], sizes = [8, 16, 16], strides = [1, 1, 1]} : vector<8x18x18xf32> to vector<8x16x16xf32>
    %17 = vector.shape_cast %16 : vector<8x16x16xf32> to vector<8x256xf32>
    %18 = vector.extract_strided_slice %1 {offsets = [0, 2, 2], sizes = [8, 16, 16], strides = [1, 1, 1]} : vector<8x18x18xf32> to vector<8x16x16xf32>
    %19 = vector.shape_cast %18 : vector<8x16x16xf32> to vector<8x256xf32>
    %20 = tpu.concatenate %3, %5, %7, %9, %11, %13, %15, %17, %19 in 0 : vector<8x256xf32>, vector<8x256xf32>, vector<8x256xf32>, vector<8x256xf32>, vector<8x256xf32>, vector<8x256xf32>, vector<8x256xf32>, vector<8x256xf32>, vector<8x256xf32> -> vector<72x256xf32>
    %c0_4 = arith.constant 0 : index
    %c0_5 = arith.constant 0 : index
    %21 = vector.load %arg3[%c0_4, %c0_5] : memref<16x72xf32, #tpu.memory_space<vmem>>, vector<16x72xf32>
    %cst = arith.constant dense<0.000000e+00> : vector<16x256xf32>
    %22 = tpu.matmul %21, %20, %cst {dimension_numbers = #tpu.dot_dimension_numbers<[1], [0], [0], [1], [0, 0, 1, 1], [], []>} : vector<16x72xf32>, vector<72x256xf32>, vector<16x256xf32> -> vector<16x256xf32>
    %c0_6 = arith.constant 0 : index
    %c0_7 = arith.constant 0 : index
    %23 = vector.load %arg4[%c0_6, %c0_7] : memref<16x1xf32, #tpu.memory_space<vmem>>, vector<16x1xf32>
    %24 = vector.broadcast %23 : vector<16x1xf32> to vector<16x256xf32>
    %25 = arith.addf %22, %24 : vector<16x256xf32>
    %cst_8 = arith.constant 0.000000e+00 : f32
    %26 = vector.broadcast %cst_8 : f32 to vector<16x256xf32>
    %27 = arith.maximumf %25, %26 : vector<16x256xf32>
    %c0_9 = arith.constant 0 : index
    %c0_10 = arith.constant 0 : index
    %28 = vector.load %arg5[%c0_9, %c0_10] : memref<16x16xf32, #tpu.memory_space<vmem>>, vector<16x16xf32>
    %cst_11 = arith.constant dense<0.000000e+00> : vector<16x256xf32>
    %29 = tpu.matmul %28, %27, %cst_11 {dimension_numbers = #tpu.dot_dimension_numbers<[1], [0], [0], [1], [0, 0, 1, 1], [], []>} : vector<16x16xf32>, vector<16x256xf32>, vector<16x256xf32> -> vector<16x256xf32>
    %c0_12 = arith.constant 0 : index
    %c0_13 = arith.constant 0 : index
    %30 = vector.load %arg7[%c0_12, %c0_13] : memref<16x1xf32, #tpu.memory_space<vmem>>, vector<16x1xf32>
    %31 = vector.broadcast %30 : vector<16x1xf32> to vector<16x256xf32>
    %32 = arith.addf %29, %31 : vector<16x256xf32>
    %33 = vector.extract_strided_slice %1 {offsets = [0, 1, 1], sizes = [8, 16, 16], strides = [1, 1, 1]} : vector<8x18x18xf32> to vector<8x16x16xf32>
    %34 = vector.shape_cast %33 : vector<8x16x16xf32> to vector<8x256xf32>
    %c0_14 = arith.constant 0 : index
    %c0_15 = arith.constant 0 : index
    %35 = vector.load %arg6[%c0_14, %c0_15] : memref<16x8xf32, #tpu.memory_space<vmem>>, vector<16x8xf32>
    %cst_16 = arith.constant dense<0.000000e+00> : vector<16x256xf32>
    %36 = tpu.matmul %35, %34, %cst_16 {dimension_numbers = #tpu.dot_dimension_numbers<[1], [0], [0], [1], [0, 0, 1, 1], [], []>} : vector<16x8xf32>, vector<8x256xf32>, vector<16x256xf32> -> vector<16x256xf32>
    %37 = arith.addf %32, %36 : vector<16x256xf32>
    %cst_17 = arith.constant 0.000000e+00 : f32
    %38 = vector.broadcast %cst_17 : f32 to vector<16x256xf32>
    %39 = arith.maximumf %37, %38 : vector<16x256xf32>
    %c0_18 = arith.constant 0 : index
    %c0_19 = arith.constant 0 : index
    %c0_20 = arith.constant 0 : index
    %40 = vector.load %arg8[%c0_18, %c0_19, %c0_20] : memref<1x16x256xf32, #tpu.memory_space<vmem>>, vector<1x16x256xf32>
    %41 = vector.shape_cast %40 : vector<1x16x256xf32> to vector<16x256xf32>
    %42 = vector.shape_cast %39 : vector<16x256xf32> to vector<1x16x256xf32>
    tpu.vector_store %arg8[%c0_18, %c0_19, %c0_20], %42 {strides = array<i32>} : memref<1x16x256xf32, #tpu.memory_space<vmem>>, vector<1x16x256xf32>,
    return
  }
  func.func @transform_0(%arg0: i32, %arg1: i32) -> (i32, i32, i32, i32, i32) {
    %c0_i32 = arith.constant 0 : i32
    %c0_i32_0 = arith.constant 0 : i32
    %c0_i32_1 = arith.constant 0 : i32
    %c0_i32_2 = arith.constant 0 : i32
    return %arg0, %c0_i32, %arg1, %c0_i32_0, %c0_i32_1 : i32, i32, i32, i32, i32
  }
  func.func @transform_1(%arg0: i32, %arg1: i32) -> (i32, i32) {
    %c0_i32 = arith.constant 0 : i32
    %c0_i32_0 = arith.constant 0 : i32
    %c0_i32_1 = arith.constant 0 : i32
    return %c0_i32, %c0_i32_0 : i32, i32
  }
  func.func @transform_2(%arg0: i32, %arg1: i32) -> (i32, i32) {
    %c0_i32 = arith.constant 0 : i32
    %c0_i32_0 = arith.constant 0 : i32
    %c0_i32_1 = arith.constant 0 : i32
    return %c0_i32, %c0_i32_0 : i32, i32
  }
  func.func @transform_3(%arg0: i32, %arg1: i32) -> (i32, i32) {
    %c0_i32 = arith.constant 0 : i32
    %c0_i32_0 = arith.constant 0 : i32
    %c0_i32_1 = arith.constant 0 : i32
    return %c0_i32, %c0_i32_0 : i32, i32
  }
  func.func @transform_4(%arg0: i32, %arg1: i32) -> (i32, i32) {
    %c0_i32 = arith.constant 0 : i32
    %c0_i32_0 = arith.constant 0 : i32
    %c0_i32_1 = arith.constant 0 : i32
    return %c0_i32, %c0_i32_0 : i32, i32
  }
  func.func @transform_5(%arg0: i32, %arg1: i32) -> (i32, i32) {
    %c0_i32 = arith.constant 0 : i32
    %c0_i32_0 = arith.constant 0 : i32
    %c0_i32_1 = arith.constant 0 : i32
    return %c0_i32, %c0_i32_0 : i32, i32
  }
  func.func @transform_6(%arg0: i32, %arg1: i32) -> (i32, i32, i32) {
    %c0_i32 = arith.constant 0 : i32
    %c0_i32_0 = arith.constant 0 : i32
    return %arg0, %c0_i32, %arg1 : i32, i32, i32
  }
}

</mosaic_0001>

<bundles_post_ra>
// kernel: tpu_custom_call.1
= control target key start
LH: loop header
LB: loop body
LE: loop exit
PB: predicated region body
PF: predicated region fallthrough
CT: control target
= control target key end

     0   :  { %11 = vsyncpa [#allocation3], 0  ;;  %s7482_s0 = inlined_call_operand.vmem [shape: f32[2,8,1,18,18], index: 0, kind: input, shape index: {}]   ;;  %s7483_s1 = inlined_call_operand.vmem [shape: f32[16,72], index: 1, kind: input, shape index: {}]   ;;  %s7484_s2 = inlined_call_operand.vmem [shape: f32[16,1], index: 2, kind: input, shape index: {}]   ;;  %s7485_s3 = inlined_call_operand.vmem [shape: f32[16,16], index: 3, kind: input, shape index: {}]   ;;  %s7486_s4 = inlined_call_operand.vmem [shape: f32[16,8], index: 4, kind: input, shape index: {}]   ;;  %s7487_s5 = inlined_call_operand.vmem [shape: f32[16,1], index: 5, kind: input, shape index: {}]   ;;  %s7488_s6 = inlined_call_operand.hbm [shape: f32[2,16,256], index: 6, kind: output, shape index: {}]  }
   0x1   :  { %13 = vsyncpa [#allocation3 + $0x1], 0  ;;  %s4719_s21 = smov 0   ;;  %s4721_s22 = smov 0  }
   0x2   :  { %s4723_s23 = smov 0   ;;  %s4725_s24 = smov 0  }
   0x3   :  { %s4727_s25 = smov 0   ;;  %s4729_s26 = smov 0  }
   0x4 LB: > { %s4209_s27 = sadd.s32 4294967295, %s4667_s26   ;;  %s4210_s28 = sadd.s32 4294967294, %s4667_s26   ;;  %s4667_s26 = sphi %s4729_s26, %s19_s26   ;;  %s4663_s25 = sphi %s4727_s25, %s8007_s25   ;;  %s4659_s24 = sphi %s4725_s24, %s8006_s24   ;;  %s4655_s23 = sphi %s4723_s23, %s8005_s23   ;;  %s4651_s22 = sphi %s4721_s22, %s8004_s22   ;;  %s4647_s21 = sphi %s4719_s21, %s8003_s21  }
   0x5   : > { %s31_s29 = sadd.s32 1, %s4663_s25  ;;  %s173_s30 = sadd.s32 1, %s4655_s23 }
   0x6   : > { %p33_p0 = scmp.ge.s32.totalorder %s31_s29, 2  ;;  %p183_p1 = scmp.ne.s32.totalorder %s4655_s23, %s4651_s22 }
   0x7   : > { %p184_p2 = scmp.eq.s32.totalorder %s4209_s27, 1  ;;  %p189_p3 = scmp.ne.s32.totalorder %s4651_s22, %s4647_s21 }
   0x8   : > { %s8009_s29 = smov (%p33_p0, %s31_s29), 0  ;;  %p190_p5 = scmp.eq.s32.totalorder %s4210_s28, 1 }
   0x9   : > { %p4759_p4 = por %p184_p2, %p183_p1  ;;  %s168_s8 = ssub.s32 %s4663_s25, %s8009_s29 }
   0xa   : > { %p4213_p6 = scmp.ge.s32.totalorder %s4667_s26, 1  ;;  %p171_p7 = scmp.eq.s32.totalorder %s168_s8, 0 }
   0xb   : > { %p4766_p8 = por %p190_p5, %p189_p3  ;;  %p235_p9 = scmp.lt.s32.totalorder %s4667_s26, 3 }
   0xc   : > { %s4772_s10 = scalar_select %p171_p7, %s4655_s23, %s173_s30  }
   0xd   : > { %p236_p10 = pnand %p4213_p6, %p235_p9 }
   0xf   : > { %239 = sbr.rel (%p236_p10) target bundleno = 981 (0x3d5), region = 44 }
  0x16   : > { %p269_p11 = scmp.lt.s32.totalorder %s4659_s24, 1  ;;  %s4669_s16 = smov 127   ;;  %vm1456_vm0 = vcmask 1046528   ;;  %vm2635_vm1 = vcmask 1045504   ;;  %v4670_v45 = vmov 1983009808   ;;  %v308_v47 = vlaneseq }
  0x17   : > { %v306_v46 = vunpack.c.l.s4 %v4670_v45  ;;  %s4671_s17 = smov 126   ;;  %s4673_s18 = smov 16   ;;  %vm631_vm2 = vcmask 130048   ;;  %vm633_vm3 = vcmask 261120   ;;  %vm635_vm4 = vcmask 392192  }
  0x18   : > { %s270_s11 = scalar_select %p269_p11, %s4659_s24, 1  ;;  %v309_v59 = vshrl.u32 %v308_v47, 7  ;;  %vm637_vm5 = vcmask 523264   ;;  %vm639_vm6 = vcmask 654336   ;;  %vm641_vm7 = vcmask 785408  }
  0x19   : > { %v307_v58 = vunpack.c.0.s8 %v306_v46  ;;  %s4674_s19 = smov 32   ;;  %s4675_s20 = smov 48   ;;  %vm643_vm8 = vcmask 916480   ;;  %vm3828_vm9 = vcmask 588800   ;;  %vm4015_vm10 = vcmask 64512  }
  0x1a   : > { %s4256_s12 = smul.u32 192, %s270_s11  ;;  %s4676_s27 = smov 64  }
  0x1b   : > { %s4677_s28 = smov 80   ;;  %s4678_s30 = smov 96  }
  0x1c   : > { %s4779_s15 = scalar_lea.vmem %s7482_s0, %s4256_s12  ;;  %s4679_s8 = smov 112  }
  0x1d   : > { %v4782_v0 = vld [vmem:[%s4779_s15 + $0x38] sm:$0xff]  ;;  %v4785_v1 = vld [vmem:[%s4779_s15 + $0x8] sm:$0xff]  ;;  %v4792_v2 = vld [vmem:[%s4779_s15 + $0x50] sm:$0xff] }
  0x1e   : > { %678 = vrot.lane.b32.xlu1 %v4782_v0, %s4669_s16  ;;  %670 = vrot.lane.b32.xlu0 %v4785_v1, %s4669_s16  ;;  %v4795_v3 = vld [vmem:[%s4779_s15 + $0x20] sm:$0xff]  ;;  %v439_v4 = vcombine.low %v4785_v1, %v4782_v0  ;;  %v4802_v6 = vld [vmem:[%s4779_s15 + $0x30] sm:$0xff]  ;;  %v1468_v10 = vrot.slane %v4782_v0, 1  ;;  %v2637_v23 = vrot.slane %v4785_v1, 2  ;;  %v2652_v27 = vrot.slane %v4792_v2, 2 }
  0x1f   : > { %v455_v5 = vcombine.low %v4795_v3, %v4792_v2  ;;  %v1467_v7 = vrot.slane %v4802_v6, 1  ;;  %v4810_v8 = vld [vmem:[%s4779_s15 + $0x80] sm:$0xff]  ;;  %v4813_v9 = vld [vmem:[%s4779_s15 + $0x68] sm:$0xff]  ;;  %v4825_v14 = vld [vmem:[%s4779_s15 + $0xb0] sm:$0xff]  ;;  %v2642_v20 = vrot.slane %v4795_v3, 2  ;;  %v2647_v33 = vrot.slane %v4782_v0, 2 }
  0x20   : > { %v287_v11 = vld [vmem:[%s4779_s15 + $0x40] sm:$0x3]  ;;  %v4828_v15 = vld [vmem:[%s4779_s15 + $0x98] sm:$0xff]  ;;  %v4848_v19 = vld [vmem:[%s4779_s15 + $0x48] sm:$0xff]  ;;  %v2662_v37 = vrot.slane %v4810_v8, 2  ;;  %v2657_v43 = vrot.slane %v4813_v9, 2 }
  0x21   : > { %v1470_v12 = vrot.slane %v287_v11, 1  ;;  %v4818_v13 = vsel %vm1456_vm0, %v1467_v7, %v1468_v10  ;;  %v4838_v17 = vld [vmem:[%s4779_s15 + $0x18] sm:$0xff]  ;;  %v4841_v18 = vld [vmem:[%s4779_s15] sm:$0xff]  ;;  %v4852_v21 = vld [vmem:[%s4779_s15 + $0x28] sm:$0x3]  ;;  %v2649_v34 = vrot.slane %v287_v11, 2 }
  0x22   : > { %682 = vrot.lane.b32.xlu1 %v4792_v2, %s4669_s16  ;;  %674 = vrot.lane.b32.xlu0 %v4795_v3, %s4669_s16  ;;  %v2644_v22 = vrot.slane %v4852_v21, 2  ;;  %v4861_v24 = vld [vmem:[%s4779_s15 + $0x78] sm:$0xff]  ;;  %v4864_v25 = vld [vmem:[%s4779_s15 + $0x60] sm:$0xff]  ;;  %v2672_v51 = vrot.slane %v4825_v14, 2  ;;  %v2667_v55 = vrot.slane %v4828_v15, 2  ;;  %v2641_v57 = vrot.slane %v4838_v17, 2 }
  0x23   : > { %v4831_v16 = vsel %vm1456_vm0, %v1468_v10, %v1470_v12  ;;  %v4867_v26 = vld [vmem:[%s4779_s15 + $0x10] sm:$0x3]  ;;  %v4871_v28 = vld [vmem:[%s4779_s15 + $0x58] sm:$0x3]  ;;  %v4878_v31 = vld [vmem:[%s4779_s15 + $0x88] sm:$0x3]  ;;  %v4904_v42 = vsel %vm2635_vm1, %v2647_v33, %v2649_v34 }
  0x24   : > { %v4874_v29 = vsel %vm2635_vm1, %v2642_v20, %v2644_v22  ;;  %v2639_v30 = vrot.slane %v4867_v26, 2  ;;  %v2654_v32 = vrot.slane %v4871_v28, 2  ;;  %v4887_v35 = vld [vmem:[%s4779_s15 + $0x70] sm:$0x3]  ;;  %v2664_v38 = vrot.slane %v4878_v31, 2  ;;  %v4895_v39 = vld [vmem:[%s4779_s15 + $0xa8] sm:$0xff] }
  0x25   : > { %v4898_v40 = vld [vmem:[%s4779_s15 + $0x90] sm:$0xff]  ;;  %v2659_v44 = vrot.slane %v4887_v35, 2  ;;  %v4909_v48 = vld [vmem:[%s4779_s15 + $0xb8] sm:$0x3]  ;;  %v4924_v53 = vld [vmem:[%s4779_s15 + $0xa0] sm:$0x3]  ;;  %v4941_v62 = vsel %vm2635_vm1, %v2641_v57, %v2642_v20  ;;  %v4948_v22 = vsub.s32 %v307_v58, %v309_v59  ;;  %v303_v58 = vcombine.low %v4841_v18, %v4802_v6 }
  0x26   : > { %690 = vrot.lane.b32.xlu1 %v4810_v8, %s4669_s16  ;;  %686 = vrot.lane.b32.xlu0 %v4813_v9, %s4669_s16  ;;  %v4890_v36 = vsel %vm2635_vm1, %v2637_v23, %v2639_v30  ;;  %v4901_v41 = vsel %vm2635_vm1, %v2652_v27, %v2654_v32  ;;  %v4916_v49 = vsel %vm2635_vm1, %v2662_v37, %v2664_v38  ;;  %v2674_v52 = vrot.slane %v4909_v48, 2 }
  0x27   : > { %v4919_v50 = vsel %vm2635_vm1, %v2657_v43, %v2659_v44  ;;  %v2669_v56 = vrot.slane %v4924_v53, 2  ;;  %v2636_v61 = vrot.slane %v4841_v18, 2  ;;  %v2651_v63 = vrot.slane %v4848_v19, 2 }
  0x28   : > { %v4927_v54 = vsel %vm2635_vm1, %v2672_v51, %v2674_v52  ;;  %v4672_v7 = vmov 1934713408   ;;  %v2646_v12 = vrot.slane %v4802_v6, 2  ;;  %v2661_v32 = vrot.slane %v4861_v24, 2 }
  0x29   : > { %v4937_v60 = vsel %vm2635_vm1, %v2667_v55, %v2669_v56  ;;  %v370_v10 = vunpack.c.l.s4 %v4672_v7  ;;  %v4945_v11 = vsel %vm2635_vm1, %v2636_v61, %v2637_v23  ;;  %v4951_v30 = vsel %vm2635_vm1, %v2651_v63, %v2652_v27 }
  0x2a   : > { %698 = vrot.lane.b32.xlu1 %v4825_v14, %s4669_s16  ;;  %694 = vrot.lane.b32.xlu0 %v4828_v15, %s4669_s16  ;;  %v4959_v20 = vsel %vm2635_vm1, %v2646_v12, %v2647_v33  ;;  %v2656_v23 = vrot.slane %v4864_v25, 2  ;;  %v447_v34 = vrot.slane %v439_v4, %v4948_v22  ;;  %v463_v27 = vrot.slane %v455_v5, %v4948_v22 }
  0x2b   : > { %v371_v38 = vunpack.c.0.s8 %v370_v10  ;;  %v4971_v44 = vsel %vm2635_vm1, %v2661_v32, %v2662_v37  ;;  %v2671_v33 = vrot.slane %v4895_v39, 2  ;;  %v2666_v46 = vrot.slane %v4898_v40, 2 }
  0x2c   : > { %7662 = vst [vmem:[#allocation5_spill] sm:$0xff] %v4971_v44  ;;  %v4974_v45 = vsel %vm2635_vm1, %v2656_v23, %v2657_v43  ;;  %v471_v4 = vcombine.low %v4813_v9, %v4828_v15  ;;  %v487_v43 = vcombine.low %v4810_v8, %v4825_v14  ;;  %v503_v47 = vcombine.low %v447_v34, %v463_v27 }
  0x2d   : > { %7663 = vst [vmem:[#allocation6_spill] sm:$0xff] %v4974_v45  ;;  %v4985_v5 = vsel %vm2635_vm1, %v2671_v33, %v2672_v51  ;;  %v4988_v37 = vsel %vm2635_vm1, %v2666_v46, %v2667_v55  ;;  %v4992_v52 = vsub.s32 %v371_v38, %v309_v59  ;;  %v319_v59 = vcombine.low %v4838_v17, %v4848_v19 }
  0x2e   : > { %672 = vrot.lane.b32.xlu1 %v4838_v17, %s4669_s16  ;;  %668 = vrot.lane.b32.xlu0 %v4841_v18, %s4669_s16  ;;  %7664 = vst [vmem:[#allocation7_spill] sm:$0xff] %v4985_v5  ;;  %7665 = vst [vmem:[#allocation8_spill] sm:$0xff] %v4988_v37  ;;  %v479_v56 = vrot.slane %v471_v4, %v4948_v22  ;;  %v495_v51 = vrot.slane %v487_v43, %v4948_v22 }
  0x2f   : > { %v5001_v57 = vrot.slane %v503_v47, %v4992_v52  ;;  %v335_v61 = vcombine.low %v4864_v25, %v4898_v40  ;;  %v311_v12 = vrot.slane %v303_v58, %v4948_v22  ;;  %v327_v32 = vrot.slane %v319_v59, %v4948_v22 }
  0x30   : > { %v535_v55 = vcombine.low %v479_v56, %v495_v51  ;;  %v351_v38 = vcombine.low %v4861_v24, %v4895_v39  ;;  %v504_v33 = vcombine.high %v447_v34, %v463_v27  ;;  %v536_v46 = vcombine.high %v479_v56, %v495_v51 }
  0x31   : > { %7666 = vst [vmem:[#allocation9_spill] sm:$0xff] %v5001_v57  ;;  %v343_v23 = vrot.slane %v335_v61, %v4948_v22  ;;  %v367_v43 = vcombine.low %v311_v12, %v327_v32  ;;  %v368_v47 = vcombine.high %v311_v12, %v327_v32  ;;  %v456_v34 = vcombine.high %v4795_v3, %v4792_v2 }
  0x32   : > { %680 = vrot.lane.b32.xlu1 %v4848_v19, %s4669_s16  ;;  %676 = vrot.lane.b32.xlu0 %v4802_v6, %s4669_s16  ;;  %v5016_v10 = vrot.slane %v535_v55, %v4992_v52  ;;  %v440_v55 = vcombine.high %v4785_v1, %v4782_v0  ;;  %v359_v63 = vrot.slane %v351_v38, %v4948_v22  ;;  %v1465_v27 = vrot.slane %v4852_v21, 1 }
  0x33   : > { %v5029_v58 = vrot.slane %v504_v33, %v4992_v52  ;;  %v5032_v59 = vrot.slane %v536_v46, %v4992_v52  ;;  %v5045_v56 = vrot.slane %v368_v47, %v4992_v52  ;;  %v470_v33 = vrot.slane %v456_v34, %v4948_v22 }
  0x34   : > { %7667 = vst [vmem:[#allocation10_spill] sm:$0xff] %v5016_v10  ;;  %v454_v51 = vrot.slane %v440_v55, %v4948_v22  ;;  %v399_v61 = vcombine.low %v343_v23, %v359_v63  ;;  %v400_v32 = vcombine.high %v343_v23, %v359_v63  ;;  %v472_v21 = vcombine.high %v4813_v9, %v4828_v15 }
  0x35   : > { %7668 = vst [vmem:[#allocation11_spill] sm:$0xff] %v5029_v58  ;;  %7669 = vst [vmem:[#allocation12_spill] sm:$0xff] %v5032_v59  ;;  %v488_v46 = vcombine.high %v4810_v8, %v4825_v14  ;;  %v320_v63 = vcombine.high %v4838_v17, %v4848_v19  ;;  %v336_v23 = vcombine.high %v4864_v25, %v4898_v40  ;;  %v7676_v12 = vrot.slane %v4795_v3, 1 }
  0x36   : > { %688 = vrot.lane.b32.xlu1 %v4861_v24, %s4669_s16  ;;  %684 = vrot.lane.b32.xlu0 %v4864_v25, %s4669_s16  ;;  %7671 = vst [vmem:[#allocation14_spill] sm:$0xff] %v5045_v56  ;;  %v5060_v47 = vrot.slane %v399_v61, %v4992_v52  ;;  %v5063_v55 = vrot.slane %v400_v32, %v4992_v52 }
  0x37   : > { %v486_v34 = vrot.slane %v472_v21, %v4948_v22  ;;  %v502_v61 = vrot.slane %v488_v46, %v4948_v22  ;;  %v519_v32 = vcombine.low %v454_v51, %v470_v33  ;;  %v334_v21 = vrot.slane %v320_v63, %v4948_v22 }
  0x38   : > { %7672 = vst [vmem:[#allocation15_spill] sm:$0xff] %v5060_v47  ;;  %7673 = vst [vmem:[#allocation16_spill] sm:$0xff] %v5063_v55  ;;  %v350_v58 = vrot.slane %v336_v23, %v4948_v22  ;;  %v352_v38 = vcombine.high %v4861_v24, %v4895_v39  ;;  %v520_v37 = vcombine.high %v454_v51, %v470_v33  ;;  %v7677_v51 = vrot.slane %v4785_v1, 1 }
  0x39   : > { %v5084_v59 = vrot.slane %v519_v32, %v4992_v52  ;;  %v552_v4 = vcombine.high %v486_v34, %v502_v61  ;;  %v5102_v23 = vsel %vm1456_vm0, %v7676_v12, %v1465_v27  ;;  %v1483_v27 = vrot.slane %v4810_v8, 1 }
  0x3a   : > { %696 = vrot.lane.b32.xlu1 %v4895_v39, %s4669_s16  ;;  %692 = vrot.lane.b32.xlu0 %v4898_v40, %s4669_s16  ;;  %v366_v46 = vrot.slane %v352_v38, %v4948_v22  ;;  %v5111_v55 = vrot.slane %v520_v37, %v4992_v52  ;;  %v1478_v12 = vrot.slane %v4813_v9, 1  ;;  %v1485_v37 = vrot.slane %v4878_v31, 1 }
  0x3b   : > { %7674 = vst [vmem:[#allocation17_spill] sm:$0xff] %v5084_v59 }
  0x3c   : > { %7678 = vst [vmem:[#allocation19_spill] sm:$0xff] %v5111_v55  ;;  %v415_v38 = vcombine.low %v350_v58, %v366_v46 }
  0x3e   : > { %1064 = vrot.lane.b32.xlu1 %v4795_v3, %s4671_s17  ;;  %1060 = vrot.lane.b32.xlu0 %v4785_v1, %s4671_s17 }
  0x42   : > { %1072 = vrot.lane.b32.xlu1 %v4792_v2, %s4671_s17  ;;  %1068 = vrot.lane.b32.xlu0 %v4782_v0, %s4671_s17  ;;  %v5042_v0 = vrot.slane %v367_v43, %v4992_v52  ;;  %v304_v43 = vcombine.high %v4841_v18, %v4802_v6 }
  0x44   : > { %7670 = vst [vmem:[#allocation13_spill] sm:$0xff] %v5042_v0  ;;  %v318_v7 = vrot.slane %v304_v43, %v4948_v22  ;;  %v1475_v43 = vrot.slane %v4871_v28, 1 }
  0x46   : > { %1080 = vrot.lane.b32.xlu1 %v4810_v8, %s4671_s17  ;;  %1076 = vrot.lane.b32.xlu0 %v4813_v9, %s4671_s17  ;;  %v383_v63 = vcombine.low %v318_v7, %v334_v21  ;;  %v7681_v8 = vrot.slane %v4792_v2, 1 }
  0x48   : > { %v5135_v9 = vsel %vm1456_vm0, %v7681_v8, %v1475_v43  ;;  %v1493_v43 = vrot.slane %v4825_v14, 1  ;;  %v1495_v8 = vrot.slane %v4909_v48, 1  ;;  %v1462_v48 = vrot.slane %v4838_v17, 1 }
  0x4a   : > { %1088 = vrot.lane.b32.xlu1 %v4825_v14, %s4671_s17  ;;  %1084 = vrot.lane.b32.xlu0 %v4828_v15, %s4671_s17  ;;  %v5180_v14 = vsel %vm1456_vm0, %v1493_v43, %v1495_v8 }
  0x4e   : > { %1062 = vrot.lane.b32.xlu1 %v4838_v17, %s4671_s17  ;;  %1058 = vrot.lane.b32.xlu0 %v4841_v18, %s4671_s17  ;;  %v1472_v17 = vrot.slane %v4848_v19, 1 }
  0x52   : > { %1070 = vrot.lane.b32.xlu1 %v4848_v19, %s4671_s17  ;;  %1066 = vrot.lane.b32.xlu0 %v4802_v6, %s4671_s17  ;;  %v1460_v6 = vrot.slane %v4867_v26, 1  ;;  %v551_v26 = vcombine.low %v486_v34, %v502_v61  ;;  %v5118_v61 = vrot.slane %v552_v4, %v4992_v52  ;;  %v5139_v34 = vrot.slane %v415_v38, %v4992_v52 }
  0x53   : > { %v1488_v38 = vrot.slane %v4828_v15, 1 }
  0x54   : > { %v5097_v32 = vrot.slane %v551_v26, %v4992_v52  ;;  %v5107_v33 = vsel %vm1456_vm0, %v7677_v51, %v1460_v6  ;;  %7679 = vst [vmem:[#allocation20_spill] sm:$0xff] %v5118_v61  ;;  %v5123_v6 = vrot.slane %v383_v63, %v4992_v52  ;;  %v384_v26 = vcombine.high %v318_v7, %v334_v21 }
  0x55   : > { %v416_v51 = vcombine.high %v350_v58, %v366_v46  ;;  %v1480_v63 = vrot.slane %v4887_v35, 1  ;;  %7682 = vst [vmem:[#allocation22_spill] sm:$0xff] %v5139_v34  ;;  %v5162_v46 = vsel %vm1456_vm0, %v1483_v27, %v1485_v37  ;;  %v1490_v58 = vrot.slane %v4924_v53, 1 }
  0x56   : > { %1078 = vrot.lane.b32.xlu1 %v4861_v24, %s4671_s17  ;;  %1074 = vrot.lane.b32.xlu0 %v4864_v25, %s4671_s17  ;;  %7675 = vst [vmem:[#allocation18_spill] sm:$0xff] %v5097_v32  ;;  %7680 = vst [vmem:[#allocation21_spill] sm:$0xff] %v5123_v6  ;;  %v5144_v31 = vrot.slane %v384_v26, %v4992_v52  ;;  %v1457_v53 = vrot.slane %v4841_v18, 1  ;;  %v7685_v37 = vrot.slane %v4795_v3, 1  ;;  %v7687_v18 = vrot.slane %v4792_v2, 1 }
  0x57   : > { %v5147_v4 = vrot.slane %v416_v51, %v4992_v52  ;;  %v5169_v51 = vsel %vm1456_vm0, %v1478_v12, %v1480_v63  ;;  %v5183_v15 = vsel %vm1456_vm0, %v1488_v38, %v1490_v58  ;;  %v7686_v58 = vrot.slane %v4785_v1, 1 }
  0x58   : > { %7683 = vst [vmem:[#allocation23_spill] sm:$0xff] %v5144_v31  ;;  %v5210_v63 = vsel %vm1456_vm0, %v1462_v48, %v7685_v37  ;;  %v5225_v3 = vsel %vm1456_vm0, %v1472_v17, %v7687_v18  ;;  %v1482_v48 = vrot.slane %v4861_v24, 1  ;;  %v1477_v1 = vrot.slane %v4864_v25, 1 }
  0x59   : > { %7684 = vst [vmem:[#allocation24_spill] sm:$0xff] %v5147_v4  ;;  %v5215_v8 = vsel %vm1456_vm0, %v1457_v53, %v7686_v58  ;;  %v1492_v2 = vrot.slane %v4895_v39, 1  ;;  %v1487_v37 = vrot.slane %v4898_v40, 1 }
  0x5a   : > { %1086 = vrot.lane.b32.xlu1 %v4895_v39, %s4671_s17  ;;  %1082 = vrot.lane.b32.xlu0 %v4898_v40, %s4671_s17  ;;  %v5234_v19 = vsel %vm1456_vm0, %v1482_v48, %v1483_v27  ;;  %v5237_v53 = vsel %vm1456_vm0, %v1477_v1, %v1478_v12 }
  0x5b   : > { %v5246_v24 = vsel %vm1456_vm0, %v1492_v2, %v1493_v43  ;;  %v5249_v25 = vsel %vm1456_vm0, %v1487_v37, %v1488_v38 }
  0x5e   : > { %1861 = vrot.lane.b32.xlu1 %v5102_v23, %s4669_s16  ;;  %1857 = vrot.lane.b32.xlu0 %v5107_v33, %s4669_s16 }
  0x62   : > { %1869 = vrot.lane.b32.xlu1 %v5135_v9, %s4669_s16  ;;  %1865 = vrot.lane.b32.xlu0 %v4831_v16, %s4669_s16 }
  0x66   : > { %1877 = vrot.lane.b32.xlu1 %v5162_v46, %s4669_s16  ;;  %1873 = vrot.lane.b32.xlu0 %v5169_v51, %s4669_s16 }
  0x6a   : > { %1885 = vrot.lane.b32.xlu1 %v5180_v14, %s4669_s16  ;;  %1881 = vrot.lane.b32.xlu0 %v5183_v15, %s4669_s16 }
  0x6e   : > { %2251 = vrot.lane.b32.xlu1 %v5102_v23, %s4671_s17  ;;  %2247 = vrot.lane.b32.xlu0 %v5107_v33, %s4671_s17 }
  0x72   : > { %2259 = vrot.lane.b32.xlu1 %v5135_v9, %s4671_s17  ;;  %2255 = vrot.lane.b32.xlu0 %v4831_v16, %s4671_s17 }
  0x76   : > { %2267 = vrot.lane.b32.xlu1 %v5162_v46, %s4671_s17  ;;  %2263 = vrot.lane.b32.xlu0 %v5169_v51, %s4671_s17 }
  0x7a   : > { %2275 = vrot.lane.b32.xlu1 %v5180_v14, %s4671_s17  ;;  %2271 = vrot.lane.b32.xlu0 %v5183_v15, %s4671_s17 }
  0x7e   : > { %1859 = vrot.lane.b32.xlu1 %v5210_v63, %s4669_s16  ;;  %1855 = vrot.lane.b32.xlu0 %v5215_v8, %s4669_s16 }
  0x82   : > { %1867 = vrot.lane.b32.xlu1 %v5225_v3, %s4669_s16  ;;  %1863 = vrot.lane.b32.xlu0 %v4818_v13, %s4669_s16 }
  0x86   : > { %1875 = vrot.lane.b32.xlu1 %v5234_v19, %s4669_s16  ;;  %1871 = vrot.lane.b32.xlu0 %v5237_v53, %s4669_s16 }
  0x8a   : > { %1883 = vrot.lane.b32.xlu1 %v5246_v24, %s4669_s16  ;;  %1879 = vrot.lane.b32.xlu0 %v5249_v25, %s4669_s16 }
  0x8e   : > { %2249 = vrot.lane.b32.xlu1 %v5210_v63, %s4671_s17  ;;  %2245 = vrot.lane.b32.xlu0 %v5215_v8, %s4671_s17 }
  0x90   : > { %v5259_v39 = vpop.permute.xlu1 %678  ;;  %v5261_v40 = vpop.permute.xlu0 %670 }
  0x91   : > { %v852_v17 = vcombine.low %v5261_v40, %v5259_v39 }
  0x92   : > { %2257 = vrot.lane.b32.xlu1 %v5225_v3, %s4671_s17  ;;  %2253 = vrot.lane.b32.xlu0 %v4818_v13, %s4671_s17 }
  0x93   : > { %v5299_v7 = vrot.slane %v852_v17, %v4948_v22 }
  0x94   : > { %v5267_v27 = vpop.permute.xlu1 %682  ;;  %v5269_v12 = vpop.permute.xlu0 %674 }
  0x95   : > { %v868_v43 = vcombine.low %v5269_v12, %v5267_v27 }
  0x96   : > { %2265 = vrot.lane.b32.xlu1 %v5234_v19, %s4671_s17  ;;  %2261 = vrot.lane.b32.xlu0 %v5237_v53, %s4671_s17 }
  0x97   : > { %v5288_v18 = vrot.slane %v868_v43, %v4948_v22 }
  0x98   : > { %v5277_v38 = vpop.permute.xlu1 %690  ;;  %v5279_v58 = vpop.permute.xlu0 %686 }
  0x99   : > { %v916_v26 = vcombine.low %v5299_v7, %v5288_v18 }
  0x9a   : > { %2273 = vrot.lane.b32.xlu1 %v5246_v24, %s4671_s17  ;;  %2269 = vrot.lane.b32.xlu0 %v5249_v25, %s4671_s17 }
  0x9b   : > { %v5331_v31 = vrot.slane %v916_v26, %v4992_v52 }
  0x9c   : > { %v5290_v48 = vpop.permute.xlu1 %698  ;;  %v5292_v1 = vpop.permute.xlu0 %694 }
  0x9d   : > { %v900_v2 = vcombine.low %v5277_v38, %v5290_v48  ;;  %v884_v37 = vcombine.low %v5279_v58, %v5292_v1  ;;  %7693 = vst [vmem:[#allocation30_spill] sm:$0xff] %v5331_v31 }
  0x9e   : > { %3040 = vrot.lane.b32.xlu1 %v4874_v29, %s4669_s16  ;;  %3036 = vrot.lane.b32.xlu0 %v4890_v36, %s4669_s16 }
  0x9f   : > { %v5306_v43 = vrot.slane %v900_v2, %v4948_v22  ;;  %v5309_v28 = vrot.slane %v884_v37, %v4948_v22 }
  0xa0   : > { %v5313_v21 = vpop.permute.xlu1 %672  ;;  %v5315_v35 = vpop.permute.xlu0 %668 }
  0xa1   : > { %7688 = vst [vmem:[#allocation25_spill] sm:$0xff] %v5313_v21  ;;  %7689 = vst [vmem:[#allocation26_spill] sm:$0xff] %v5315_v35  ;;  %v948_v17 = vcombine.low %v5309_v28, %v5306_v43 }
  0xa2   : > { %3048 = vrot.lane.b32.xlu1 %v4901_v41, %s4669_s16  ;;  %3044 = vrot.lane.b32.xlu0 %v4904_v42, %s4669_s16 }
  0xa3   : > { %v5324_v2 = vrot.slane %v948_v17, %v4992_v52 }
  0xa4   : > { %v5326_v37 = vpop.permute.xlu1 %680  ;;  %v5328_v4 = vpop.permute.xlu0 %676 }
  0xa5   : > { %7690 = vst [vmem:[#allocation27_spill] sm:$0xff] %v5324_v2  ;;  %7691 = vst [vmem:[#allocation28_spill] sm:$0xff] %v5326_v37  ;;  %v732_v17 = vcombine.low %v5313_v21, %v5326_v37  ;;  %v716_v55 = vcombine.low %v5315_v35, %v5328_v4  ;;  %v1666_v21 = vcombine.high %v5102_v23, %v5135_v9 }
  0xa6   : > { %7692 = vst [vmem:[#allocation29_spill] sm:$0xff] %v5328_v4  ;;  %3056 = vrot.lane.b32.xlu1 %v4916_v49, %s4669_s16  ;;  %3052 = vrot.lane.b32.xlu0 %v4919_v50, %s4669_s16  ;;  %v1649_v37 = vcombine.low %v5107_v33, %v4831_v16 }
  0xa7   : > { %v5352_v26 = vrot.slane %v732_v17, %v4948_v22  ;;  %v5355_v61 = vrot.slane %v716_v55, %v4948_v22 }
  0xa8   : > { %v5343_v34 = vpop.permute.xlu1 %688  ;;  %v5345_v6 = vpop.permute.xlu0 %684 }
  0xa9   : > { %7694 = vst [vmem:[#allocation31_spill] sm:$0xff] %v5355_v61  ;;  %v780_v0 = vcombine.low %v5355_v61, %v5352_v26 }
  0xaa   : > { %3064 = vrot.lane.b32.xlu1 %v4927_v54, %s4669_s16  ;;  %3060 = vrot.lane.b32.xlu0 %v4937_v60, %s4669_s16 }
  0xab   : > { %v5397_v4 = vrot.slane %v780_v0, %v4992_v52  ;;  %v1697_v0 = vcombine.low %v5162_v46, %v5180_v14 }
  0xac   : > { %v5357_v32 = vpop.permute.xlu1 %696  ;;  %v5359_v59 = vpop.permute.xlu0 %692 }
  0xad   : > { %v764_v56 = vcombine.low %v5343_v34, %v5357_v32  ;;  %v748_v47 = vcombine.low %v5345_v6, %v5359_v59  ;;  %7700 = vst [vmem:[#allocation37_spill] sm:$0xff] %v5397_v4  ;;  %v5429_v4 = vrot.slane %v1666_v21, %v4948_v22  ;;  %v7705_v21 = vld [vmem:[#allocation8_spill] sm:$0xff] }
  0xae   : > { %3038 = vrot.lane.b32.xlu1 %v4941_v62, %s4669_s16  ;;  %3034 = vrot.lane.b32.xlu0 %v4945_v11, %s4669_s16 }
  0xaf   : > { %v5370_v17 = vrot.slane %v764_v56, %v4948_v22  ;;  %v5373_v55 = vrot.slane %v748_v47, %v4948_v22  ;;  %v1665_v47 = vcombine.low %v5102_v23, %v5135_v9  ;;  %v1681_v23 = vcombine.low %v5169_v51, %v5183_v15  ;;  %7703 = vst [vmem:[#allocation40_spill] sm:$0xff] %v5429_v4 }
  0xb0   : > { %v5377_v10 = vpop.permute.xlu1 %1064  ;;  %v5379_v57 = vpop.permute.xlu0 %1060 }
  0xb1   : > { %7695 = vst [vmem:[#allocation32_spill] sm:$0xff] %v5377_v10  ;;  %7696 = vst [vmem:[#allocation33_spill] sm:$0xff] %v5379_v57  ;;  %v812_v31 = vcombine.low %v5373_v55, %v5370_v17  ;;  %v5416_v9 = vrot.slane %v1665_v47, %v4948_v22 }
  0xb2   : > { %3046 = vrot.lane.b32.xlu1 %v4951_v30, %s4669_s16  ;;  %3042 = vrot.lane.b32.xlu0 %v4959_v20, %s4669_s16 }
  0xb3   : > { %v5388_v56 = vrot.slane %v812_v31, %v4992_v52  ;;  %v1650_v31 = vcombine.high %v5107_v33, %v4831_v16  ;;  %v1698_v16 = vcombine.high %v5162_v46, %v5180_v14  ;;  %v1682_v33 = vcombine.high %v5169_v51, %v5183_v15 }
  0xb4   : > { %v5392_v2 = vpop.permute.xlu1 %1072  ;;  %v5394_v35 = vpop.permute.xlu0 %1068  ;;  %v1513_v46 = vcombine.low %v5215_v8, %v4818_v13  ;;  %v1530_v51 = vcombine.high %v5210_v63, %v5225_v3  ;;  %v1514_v14 = vcombine.high %v5215_v8, %v4818_v13  ;;  %v5448_v15 = vrot.slane %v1697_v0, %v4948_v22 }
  0xb5   : > { %7697 = vst [vmem:[#allocation34_spill] sm:$0xff] %v5388_v56  ;;  %7698 = vst [vmem:[#allocation35_spill] sm:$0xff] %v5392_v2  ;;  %v5432_v56 = vrot.slane %v1649_v37, %v4948_v22  ;;  %v5435_v47 = vrot.slane %v1650_v31, %v4948_v22  ;;  %v5451_v37 = vrot.slane %v1681_v23, %v4948_v22 }
  0xb6   : > { %7699 = vst [vmem:[#allocation36_spill] sm:$0xff] %v5394_v35  ;;  %3054 = vrot.lane.b32.xlu1 %v4971_v44, %s4669_s16  ;;  %3050 = vrot.lane.b32.xlu0 %v4974_v45, %s4669_s16  ;;  %v1529_v45 = vcombine.low %v5210_v63, %v5225_v3  ;;  %v5454_v31 = vrot.slane %v1698_v16, %v4948_v22 }
  0xb7   : > { %7704 = vst [vmem:[#allocation41_spill] sm:$0xff] %v5435_v47  ;;  %v5457_v63 = vrot.slane %v1682_v33, %v4948_v22  ;;  %v5478_v33 = vrot.slane %v1530_v51, %v4948_v22  ;;  %v1545_v51 = vcombine.low %v5237_v53, %v5249_v25  ;;  %v2844_v23 = vcombine.low %v4874_v29, %v4901_v41 }
  0xb8   : > { %v5424_v44 = vpop.permute.xlu1 %1080  ;;  %v5426_v61 = vpop.permute.xlu0 %1076  ;;  %7706 = vst [vmem:[#allocation42_spill] sm:$0xff] %v5454_v31  ;;  %v5460_v13 = vrot.slane %v1529_v45, %v4948_v22  ;;  %v1562_v45 = vcombine.high %v5234_v19, %v5246_v24  ;;  %v2845_v31 = vcombine.high %v4874_v29, %v4901_v41 }
  0xb9   : > { %7701 = vst [vmem:[#allocation38_spill] sm:$0xff] %v5424_v44  ;;  %7702 = vst [vmem:[#allocation39_spill] sm:$0xff] %v5426_v61 }
  0xba   : > { %3062 = vrot.lane.b32.xlu1 %v4985_v5, %s4669_s16  ;;  %3058 = vrot.lane.b32.xlu0 %v7705_v21, %s4669_s16  ;;  %7707 = vst [vmem:[#allocation43_spill] sm:$0xff] %v5457_v63  ;;  %v5473_v21 = vrot.slane %v1513_v46, %v4948_v22  ;;  %7709 = vst [vmem:[#allocation45_spill] sm:$0xff] %v5478_v33  ;;  %v5481_v5 = vrot.slane %v1514_v14, %v4948_v22 }
  0xbb   : > { %v1561_v46 = vcombine.low %v5234_v19, %v5246_v24  ;;  %v1546_v14 = vcombine.high %v5237_v53, %v5249_v25  ;;  %v5531_v19 = vrot.slane %v1562_v45, %v4948_v22  ;;  %v5534_v24 = vrot.slane %v1545_v51, %v4948_v22 }
  0xbc   : > { %v5462_v8 = vpop.permute.xlu1 %1088  ;;  %v5464_v3 = vpop.permute.xlu0 %1084  ;;  %7710 = vst [vmem:[#allocation46_spill] sm:$0xff] %v5481_v5  ;;  %v2829_v63 = vcombine.high %v4890_v36, %v4904_v42  ;;  %v5554_v51 = vrot.slane %v2844_v23, %v4948_v22  ;;  %v2709_v33 = vcombine.high %v4941_v62, %v4951_v30 }
  0xbd   : > { %7708 = vst [vmem:[#allocation44_spill] sm:$0xff] %v5464_v3  ;;  %v1290_v0 = vcombine.low %v5424_v44, %v5462_v8  ;;  %v1274_v16 = vcombine.low %v5426_v61, %v5464_v3  ;;  %v2828_v44 = vcombine.low %v4890_v36, %v4904_v42  ;;  %v1258_v61 = vcombine.low %v5377_v10, %v5392_v2 }
  0xbe   : > { %3430 = vrot.lane.b32.xlu1 %v4874_v29, %s4671_s17  ;;  %3426 = vrot.lane.b32.xlu0 %v4890_v36, %s4671_s17  ;;  %v1242_v3 = vcombine.low %v5379_v57, %v5394_v35  ;;  %v5528_v25 = vrot.slane %v1561_v46, %v4948_v22  ;;  %7713 = vst [vmem:[#allocation49_spill] sm:$0xff] %v5531_v19  ;;  %7717 = vst [vmem:[#allocation53_spill] sm:$0xff] %v5554_v51 }
  0xbf   : > { %v5541_v57 = vrot.slane %v1290_v0, %v4948_v22  ;;  %v5544_v53 = vrot.slane %v1274_v16, %v4948_v22  ;;  %v5551_v45 = vrot.slane %v1546_v14, %v4948_v22  ;;  %v2876_v29 = vcombine.low %v4916_v49, %v4927_v54 }
  0xc0   : > { %v5503_v4 = vpop.permute.xlu1 %1062  ;;  %v5505_v47 = vpop.permute.xlu0 %1058  ;;  %v2860_v36 = vcombine.low %v4919_v50, %v4937_v60  ;;  %v5567_v0 = vrot.slane %v1242_v3, %v4948_v22  ;;  %v5584_v14 = vrot.slane %v2845_v31, %v4948_v22  ;;  %v5587_v10 = vrot.slane %v2829_v63, %v4948_v22 }
  0xc1   : > { %7711 = vst [vmem:[#allocation47_spill] sm:$0xff] %v5503_v4  ;;  %7712 = vst [vmem:[#allocation48_spill] sm:$0xff] %v5505_v47  ;;  %v1338_v23 = vcombine.low %v5544_v53, %v5541_v57  ;;  %v5600_v3 = vrot.slane %v2876_v29, %v4948_v22  ;;  %v2708_v63 = vcombine.low %v4941_v62, %v4951_v30 }
  0xc2   : > { %3438 = vrot.lane.b32.xlu1 %v4901_v41, %s4671_s17  ;;  %3434 = vrot.lane.b32.xlu0 %v4904_v42, %s4671_s17  ;;  %7716 = vst [vmem:[#allocation52_spill] sm:$0xff] %v5551_v45  ;;  %v5561_v41 = vrot.slane %v2828_v44, %v4948_v22  ;;  %v5564_v42 = vrot.slane %v1258_v61, %v4948_v22  ;;  %7719 = vst [vmem:[#allocation55_spill] sm:$0xff] %v5584_v14 }
  0xc3   : > { %v2877_v44 = vcombine.high %v4916_v49, %v4927_v54  ;;  %v2861_v61 = vcombine.high %v4919_v50, %v4937_v60  ;;  %7720 = vst [vmem:[#allocation56_spill] sm:$0xff] %v5587_v10  ;;  %7721 = vst [vmem:[#allocation57_spill] sm:$0xff] %v5600_v3  ;;  %v5603_v31 = vrot.slane %v2860_v36, %v4948_v22 }
  0xc4   : > { %v5546_v46 = vpop.permute.xlu1 %1070  ;;  %v5548_v35 = vpop.permute.xlu0 %1066  ;;  %7718 = vst [vmem:[#allocation54_spill] sm:$0xff] %v5561_v41  ;;  %v1306_v5 = vcombine.low %v5567_v0, %v5564_v42  ;;  %v869_v45 = vcombine.high %v5269_v12, %v5267_v27  ;;  %v5665_v10 = vrot.slane %v2709_v33, %v4948_v22  ;;  %v917_v3 = vcombine.high %v5299_v7, %v5288_v18  ;;  %v7748_v41 = vld [vmem:[#allocation34_spill] sm:$0xff] }
  0xc5   : > { %7714 = vst [vmem:[#allocation50_spill] sm:$0xff] %v5546_v46  ;;  %7715 = vst [vmem:[#allocation51_spill] sm:$0xff] %v5548_v35  ;;  %v5616_v29 = vrot.slane %v2877_v44, %v4948_v22  ;;  %v5619_v36 = vrot.slane %v2861_v61, %v4948_v22  ;;  %v5632_v44 = vrot.slane %v1338_v23, %v4992_v52 }
  0xc6   : > { %3446 = vrot.lane.b32.xlu1 %v4916_v49, %s4671_s17  ;;  %3442 = vrot.lane.b32.xlu0 %v4919_v50, %s4671_s17  ;;  %7722 = vst [vmem:[#allocation58_spill] sm:$0xff] %v5603_v31  ;;  %v2692_v50 = vcombine.low %v4945_v11, %v4959_v20  ;;  %7728 = vst [vmem:[#allocation64_spill] sm:$0xff] %v5665_v10  ;;  %v901_v33 = vcombine.high %v5277_v38, %v5290_v48 }
  0xc7   : > { %7723 = vst [vmem:[#allocation59_spill] sm:$0xff] %v5616_v29  ;;  %7724 = vst [vmem:[#allocation60_spill] sm:$0xff] %v5619_v36  ;;  %v949_v7 = vcombine.high %v5309_v28, %v5306_v43  ;;  %v853_v28 = vcombine.high %v5261_v40, %v5259_v39  ;;  %v765_v38 = vcombine.high %v5343_v34, %v5357_v32  ;;  %v7737_v43 = vld [vmem:[#allocation31_spill] sm:$0xff] }
  0xc8   : > { %v5591_v2 = vpop.permute.xlu1 %1078  ;;  %v5593_v16 = vpop.permute.xlu0 %1074  ;;  %7725 = vst [vmem:[#allocation61_spill] sm:$0xff] %v5632_v44  ;;  %v5686_v18 = vrot.slane %v2692_v50, %v4948_v22  ;;  %v813_v48 = vcombine.high %v5373_v55, %v5370_v17  ;;  %v781_v17 = vcombine.high %v7737_v43, %v5352_v26  ;;  %v7738_v55 = vld [vmem:[#allocation28_spill] sm:$0xff]  ;;  %v7741_v50 = vld [vmem:[#allocation26_spill] sm:$0xff] }
  0xc9   : > { %v7745_v43 = vld [vmem:[#allocation30_spill] sm:$0xff] }
  0xca   : > { %3454 = vrot.lane.b32.xlu1 %v4927_v54, %s4671_s17  ;;  %3450 = vrot.lane.b32.xlu0 %v4937_v60, %s4671_s17  ;;  %v2693_v54 = vcombine.high %v4945_v11, %v4959_v20  ;;  %v5647_v60 = vrot.slane %v1306_v5, %v4992_v52  ;;  %v5662_v5 = vrot.slane %v2708_v63, %v4948_v22 }
  0xcb   : > { %v885_v63 = vcombine.high %v5279_v58, %v5292_v1  ;;  %7730 = vst [vmem:[#allocation66_spill] sm:$0xff] %v5686_v18  ;;  %v749_v58 = vcombine.high %v5345_v6, %v5359_v59  ;;  %v5710_v1 = vrot.slane %v869_v45, %v4948_v22  ;;  %v5726_v59 = vrot.slane %v901_v33, %v4948_v22  ;;  %v7739_v45 = vld [vmem:[#allocation25_spill] sm:$0xff] }
  0xcc   : > { %v5634_v61 = vpop.permute.xlu1 %1086  ;;  %v5636_v49 = vpop.permute.xlu0 %1082  ;;  %7726 = vst [vmem:[#allocation62_spill] sm:$0xff] %v5647_v60  ;;  %7727 = vst [vmem:[#allocation63_spill] sm:$0xff] %v5662_v5  ;;  %v5689_v19 = vrot.slane %v2693_v54, %v4948_v22  ;;  %v5732_v6 = vrot.slane %v949_v7, %v4992_v52  ;;  %v5747_v33 = vrot.slane %v765_v38, %v4948_v22  ;;  %v7744_v7 = vld [vmem:[#allocation27_spill] sm:$0xff] }
  0xcd   : > { %v1154_v23 = vcombine.low %v5591_v2, %v5634_v61  ;;  %v1138_v14 = vcombine.low %v5593_v16, %v5636_v49  ;;  %v5729_v34 = vrot.slane %v885_v63, %v4948_v22  ;;  %v5750_v26 = vrot.slane %v749_v58, %v4948_v22 }
  0xce   : > { %3428 = vrot.lane.b32.xlu1 %v4941_v62, %s4671_s17  ;;  %3424 = vrot.lane.b32.xlu0 %v4945_v11, %s4671_s17  ;;  %v1122_v62 = vcombine.low %v5503_v4, %v5546_v46  ;;  %v1106_v11 = vcombine.low %v5505_v47, %v5548_v35  ;;  %7731 = vst [vmem:[#allocation67_spill] sm:$0xff] %v5689_v19  ;;  %v7749_v19 = vld [vmem:[#allocation37_spill] sm:$0xff] }
  0xcf   : > { %v5692_v51 = vrot.slane %v1154_v23, %v4948_v22  ;;  %v5695_v12 = vrot.slane %v1138_v14, %v4948_v22  ;;  %v7740_v14 = vld [vmem:[#allocation29_spill] sm:$0xff]  ;;  %v5753_v63 = vrot.slane %v813_v48, %v4992_v52  ;;  %v845_v38 = vcombine.high %v7749_v19, %v7748_v41 }
  0xd0   : > { %v5673_v31 = vpop.permute.xlu1 %1861  ;;  %v5675_v27 = vpop.permute.xlu0 %1857  ;;  %v5719_v39 = vrot.slane %v1106_v11, %v4948_v22  ;;  %v717_v54 = vcombine.high %v7741_v50, %v7740_v14  ;;  %v7743_v11 = vld [vmem:[#allocation6_spill] sm:$0xff]  ;;  %v7750_v58 = vcombine.low %v5432_v56, %v5416_v9  ;;  %v7752_v48 = vcombine.low %v5451_v37, %v5448_v15  ;;  %v7763_v46 = vld [vmem:[#allocation13_spill] sm:$0xff] }
  0xd1   : > { %7729 = vst [vmem:[#allocation65_spill] sm:$0xff] %v5675_v27  ;;  %7732 = vst [vmem:[#allocation68_spill] sm:$0xff] %v5692_v51  ;;  %v1202_v23 = vcombine.low %v5695_v12, %v5692_v51  ;;  %v964_v18 = vcombine.low %v5729_v34, %v5726_v59  ;;  %v795_v5 = vrot.slane %v781_v17, %v4992_v52 }
  0xd2   : > { %7733 = vst [vmem:[#allocation69_spill] sm:$0xff] %v5695_v12  ;;  %3436 = vrot.lane.b32.xlu1 %v4951_v30, %s4671_s17  ;;  %3432 = vrot.lane.b32.xlu0 %v4959_v20, %s4671_s17  ;;  %v5713_v30 = vrot.slane %v917_v3, %v4992_v52  ;;  %v5716_v20 = vrot.slane %v1122_v62, %v4948_v22  ;;  %7735 = vst [vmem:[#allocation71_spill] sm:$0xff] %v5719_v39  ;;  %v7742_v62 = vld [vmem:[#allocation5_spill] sm:$0xff]  ;;  %v7764_v12 = vld [vmem:[#allocation15_spill] sm:$0xff] }
  0xd3   : > { %v733_v3 = vcombine.high %v7739_v45, %v7738_v55  ;;  %v981_v55 = vcombine.high %v7745_v43, %v7744_v7  ;;  %v5769_v10 = vrot.slane %v7750_v58, %v4992_v52  ;;  %v5775_v7 = vrot.slane %v7752_v48, %v4992_v52  ;;  %v7755_v48 = vld [vmem:[#allocation7_spill] sm:$0xff] }
  0xd4   : > { %7734 = vst [vmem:[#allocation70_spill] sm:$0xff] %v5716_v20  ;;  %v5721_v40 = vpop.permute.xlu1 %1869  ;;  %v5723_v32 = vpop.permute.xlu0 %1865  ;;  %v1170_v45 = vcombine.low %v5719_v39, %v5716_v20  ;;  %v867_v43 = vrot.slane %v853_v28, %v4948_v22  ;;  %v982_v41 = vcombine.low %v5713_v30, %v5732_v6  ;;  %v5787_v58 = vrot.slane %v717_v54, %v4948_v22  ;;  %v7756_v28 = vld [vmem:[#allocation8_spill] sm:$0xff] }
  0xd5   : > { %7736 = vst [vmem:[#allocation72_spill] sm:$0xff] %v5723_v32  ;;  %7751 = vst [vmem:[#allocation25_spill] sm:$0xff] %v5769_v10  ;;  %v5784_v19 = vrot.slane %v733_v3, %v4948_v22  ;;  %v5790_v36 = vrot.slane %v1202_v23, %v4992_v52  ;;  %v828_v29 = vcombine.low %v5750_v26, %v5747_v33  ;;  %v7758_v3 = vld [vmem:[#allocation10_spill] sm:$0xff] }
  0xd6   : > { %3444 = vrot.lane.b32.xlu1 %v7742_v62, %s4671_s17  ;;  %3440 = vrot.lane.b32.xlu0 %v7743_v11, %s4671_s17  ;;  %7753 = vst [vmem:[#allocation29_spill] sm:$0xff] %v5775_v7  ;;  %v932_v17 = vcombine.low %v867_v43, %v5710_v1  ;;  %v7757_v11 = vld [vmem:[#allocation9_spill] sm:$0xff]  ;;  %v846_v54 = vcombine.low %v795_v5, %v5753_v63 }
  0xd7   : > { %7754 = vst [vmem:[#allocation26_spill] sm:$0xff] %v5790_v36  ;;  %v7759_v39 = vcombine.high %v7757_v11, %v7758_v3  ;;  %v5804_v23 = vrot.slane %v1170_v45, %v4992_v52  ;;  %v2055_v47 = vcombine.low %v5673_v31, %v5721_v40  ;;  %v7765_v51 = vcombine.high %v7763_v46, %v7764_v12 }
  0xd8   : > { %v5759_v14 = vpop.permute.xlu1 %1877  ;;  %v5761_v50 = vpop.permute.xlu0 %1873  ;;  %v5836_v12 = vrot.slane %v828_v29, %v4992_v52  ;;  %v7775_v29 = vld [vmem:[#allocation14_spill] sm:$0xff] }
  0xd9   : > { %7746 = vst [vmem:[#allocation31_spill] sm:$0xff] %v5759_v14  ;;  %7747 = vst [vmem:[#allocation28_spill] sm:$0xff] %v5761_v50  ;;  %v4326_v20 = vpack.i.bf16 %v981_v55, %v7759_v39  ;;  %v4331_v3 = vpack.i.bf16 %v845_v38, %v7765_v51  ;;  %v965_v39 = vcombine.high %v5729_v34, %v5726_v59  ;;  %v7766_v51 = vld [vmem:[#allocation11_spill] sm:$0xff]  ;;  %v7767_v38 = vld [vmem:[#allocation12_spill] sm:$0xff] }
  0xda   : > { %3452 = vrot.lane.b32.xlu1 %v7755_v48, %s4671_s17  ;;  %3448 = vrot.lane.b32.xlu0 %v7756_v28, %s4671_s17  ;;  %7760 = vst [vmem:[#allocation5_spill] sm:$0xff] %v5804_v23  ;;  %v2039_v28 = vcombine.low %v5675_v27, %v5723_v32  ;;  %v5820_v55 = vrot.slane %v964_v18, %v4992_v52 }
  0xdb   : > { %v796_v27 = vcombine.low %v5787_v58, %v5784_v19  ;;  %v7768_v59 = vcombine.low %v7766_v51, %v7767_v38 }
  0xdc   : > { %v5810_v35 = vpop.permute.xlu1 %1885  ;;  %v5812_v4 = vpop.permute.xlu0 %1881 }
  0xdd   : > { %7761 = vst [vmem:[#allocation7_spill] sm:$0xff] %v5810_v35  ;;  %7762 = vst [vmem:[#allocation73_spill] sm:$0xff] %v5812_v4  ;;  %v2087_v45 = vcombine.low %v5759_v14, %v5810_v35  ;;  %v2071_v11 = vcombine.low %v5761_v50, %v5812_v4  ;;  %v4336_v34 = vpack.i.bf16 %v982_v41, %v7768_v59  ;;  %v7776_v4 = vld [vmem:[#allocation16_spill] sm:$0xff] }
  0xde   : > { %4327 = vrot.lane.b32.xlu0 %v4326_v20, %s4673_s18  ;;  %4332 = vrot.lane.b32.xlu1 %v4331_v3, %s4673_s18  ;;  %v983_v20 = vcombine.high %v5713_v30, %v5732_v6  ;;  %v5847_v3 = vrot.slane %v2055_v47, %v4948_v22  ;;  %v5850_v41 = vrot.slane %v2039_v28, %v4948_v22 }
  0xdf   : > { %v5839_v46 = vrot.slane %v2087_v45, %v4948_v22  ;;  %v5842_v50 = vrot.slane %v2071_v11, %v4948_v22  ;;  %v7777_v45 = vcombine.low %v7775_v29, %v7776_v4  ;;  %v847_v11 = vcombine.high %v795_v5, %v5753_v63 }
  0xe0   : > { %7771 = vst [vmem:[#allocation74_spill] sm:$0xff] %v5847_v3  ;;  %7772 = vst [vmem:[#allocation75_spill] sm:$0xff] %v5850_v41  ;;  %v5852_v59 = vpop.permute.xlu1 %2251  ;;  %v5854_v18 = vpop.permute.xlu0 %2247  ;;  %v933_v35 = vcombine.high %v867_v43, %v5710_v1  ;;  %v940_v30 = vrot.slane %v932_v17, %v4992_v52  ;;  %v804_v28 = vrot.slane %v796_v27, %v4992_v52 }
  0xe1   : > { %7769 = vst [vmem:[#allocation11_spill] sm:$0xff] %v5839_v46  ;;  %7770 = vst [vmem:[#allocation12_spill] sm:$0xff] %v5842_v50  ;;  %v4341_v14 = vpack.i.bf16 %v846_v54, %v7777_v45  ;;  %v2135_v32 = vcombine.low %v5842_v50, %v5839_v46  ;;  %v1778_v5 = vcombine.high %v5769_v10, %v5775_v7 }
  0xe2   : > { %7773 = vst [vmem:[#allocation76_spill] sm:$0xff] %v5852_v59  ;;  %7774 = vst [vmem:[#allocation77_spill] sm:$0xff] %v5854_v18  ;;  %4337 = vrot.lane.b32.xlu0 %v4336_v34, %s4674_s19  ;;  %v5874_v1 = vrot.slane %v965_v39, %v4992_v52  ;;  %v984_v63 = vcombine.low %v940_v30, %v5820_v55  ;;  %v7778_v27 = vcombine.low %v5473_v21, %v5460_v13 }
  0xe3   : > { %4342 = vrot.lane.b32.xlu1 %v4341_v14, %s4674_s19  ;;  %v7780_v17 = vcombine.low %v5534_v24, %v5528_v25  ;;  %v2103_v14 = vcombine.low %v5850_v41, %v5847_v3  ;;  %v7784_v45 = vcombine.high %v7766_v51, %v7767_v38  ;;  %v848_v10 = vcombine.low %v804_v28, %v5836_v12 }
  0xe4   : > { %v5881_v43 = vrot.slane %v7778_v27, %v4992_v52  ;;  %v5891_v34 = vpop.permute.xlu1 %2259  ;;  %v5893_v39 = vpop.permute.xlu0 %2255  ;;  %v7785_v27 = vcombine.high %v7775_v29, %v7776_v4  ;;  %v7786_v7 = vcombine.high %v5432_v56, %v5416_v9  ;;  %v7787_v51 = vcombine.high %v5451_v37, %v5448_v15  ;;  %v7791_v37 = vld [vmem:[#allocation17_spill] sm:$0xff] }
  0xe5   : > { %v5887_v54 = vrot.slane %v7780_v17, %v4992_v52  ;;  %7782 = vst [vmem:[#allocation78_spill] sm:$0xff] %v5891_v34  ;;  %7783 = vst [vmem:[#allocation79_spill] sm:$0xff] %v5893_v39  ;;  %v4346_v6 = vpack.i.bf16 %v983_v20, %v7784_v45  ;;  %v5903_v17 = vrot.slane %v933_v35, %v4992_v52 }
  0xe6   : > { %7779 = vst [vmem:[#allocation14_spill] sm:$0xff] %v5881_v43  ;;  %v4351_v47 = vpack.i.bf16 %v847_v11, %v7785_v27  ;;  %v5909_v41 = vrot.slane %v7786_v7, %v4992_v52  ;;  %v5915_v38 = vrot.slane %v7787_v51, %v4992_v52  ;;  %v7788_v4 = vcombine.high %v5473_v21, %v5460_v13  ;;  %v7792_v13 = vld [vmem:[#allocation18_spill] sm:$0xff]  ;;  %v7802_v27 = vld [vmem:[#allocation20_spill] sm:$0xff] }
  0xe7   : > { %7781 = vst [vmem:[#allocation16_spill] sm:$0xff] %v5887_v54  ;;  %v1339_v35 = vcombine.high %v5544_v53, %v5541_v57  ;;  %4347 = vrot.lane.b32.xlu0 %v4346_v6, %s4675_s20  ;;  %v7789_v56 = vcombine.high %v5534_v24, %v5528_v25  ;;  %v5934_v15 = vrot.slane %v2135_v32, %v4992_v52  ;;  %v7796_v32 = vld [vmem:[#allocation21_spill] sm:$0xff] }
  0xe8   : > { %v5921_v20 = vrot.slane %v7788_v4, %v4992_v52  ;;  %4352 = vrot.lane.b32.xlu1 %v4351_v47, %s4675_s20  ;;  %v797_v21 = vcombine.high %v5787_v58, %v5784_v19  ;;  %v7793_v57 = vcombine.low %v7791_v37, %v7792_v13  ;;  %v985_v7 = vcombine.high %v940_v30, %v5820_v55  ;;  %v5946_v25 = vpop.permute.xlu1 %2267  ;;  %v5948_v11 = vpop.permute.xlu0 %2263  ;;  %v7797_v47 = vld [vmem:[#allocation22_spill] sm:$0xff] }
  0xe9   : > { %v5931_v9 = vrot.slane %v7789_v56, %v4992_v52  ;;  %7790 = vst [vmem:[#allocation80_spill] sm:$0xff] %v5934_v15  ;;  %v986_v29 = vcombine.low %v5903_v17, %v5874_v1  ;;  %v1307_v24 = vcombine.high %v5567_v0, %v5564_v42  ;;  %7794 = vst [vmem:[#allocation17_spill] sm:$0xff] %v5946_v25 }
  0xea   : > { %v4356_v53 = vpack.i.bf16 %v984_v63, %v7793_v57  ;;  %7795 = vst [vmem:[#allocation18_spill] sm:$0xff] %v5948_v11  ;;  %v7798_v6 = vcombine.low %v7796_v32, %v7797_v47  ;;  %v1371_v58 = vcombine.high %v5647_v60, %v5632_v44  ;;  %v5956_v63 = vrot.slane %v2103_v14, %v4992_v52  ;;  %v7801_v14 = vld [vmem:[#allocation19_spill] sm:$0xff]  ;;  %v7823_v60 = vld [vmem:[#allocation70_spill] sm:$0xff] }
  0xeb   : > { %v829_v55 = vcombine.high %v5750_v26, %v5747_v33  ;;  %v849_v30 = vcombine.high %v804_v28, %v5836_v12  ;;  %v1642_v42 = vcombine.high %v5881_v43, %v5887_v54  ;;  %v1779_v0 = vcombine.low %v5909_v41, %v5915_v38  ;;  %v7808_v12 = vld [vmem:[#allocation44_spill] sm:$0xff]  ;;  %v7821_v43 = vld [vmem:[#allocation51_spill] sm:$0xff] }
  0xec   : > { %v4361_v19 = vpack.i.bf16 %v848_v10, %v7798_v6  ;;  %7799 = vst [vmem:[#allocation21_spill] sm:$0xff] %v5956_v63  ;;  %v5966_v45 = vrot.slane %v1339_v35, %v4992_v52  ;;  %4357 = vrot.lane.b32.xlu0 %v4356_v53, %s4676_s27  ;;  %v5975_v33 = vrot.slane %v797_v21, %v4992_v52  ;;  %v5992_v53 = vpop.permute.xlu1 %2275  ;;  %v7809_v10 = vld [vmem:[#allocation39_spill] sm:$0xff]  ;;  %v7822_v54 = vld [vmem:[#allocation48_spill] sm:$0xff] }
  0xed   : > { %v7800_v26 = vcombine.high %v7791_v37, %v7792_v13  ;;  %v7803_v51 = vcombine.low %v7801_v14, %v7802_v27  ;;  %v5986_v56 = vrot.slane %v1307_v24, %v4992_v52  ;;  %v2445_v57 = vcombine.low %v5852_v59, %v5891_v34  ;;  %7804 = vst [vmem:[#allocation22_spill] sm:$0xff] %v5992_v53  ;;  %v5994_v37 = vpop.permute.xlu0 %2271 }
  0xee   : > { %4362 = vrot.lane.b32.xlu1 %v4361_v19, %s4676_s27  ;;  %v2429_v21 = vcombine.low %v5854_v18, %v5893_v39  ;;  %7805 = vst [vmem:[#allocation19_spill] sm:$0xff] %v5994_v37  ;;  %v4371_v13 = vpack.i.bf16 %v1778_v5, %v1371_v58  ;;  %v2461_v24 = vcombine.low %v5948_v11, %v5994_v37  ;;  %v7824_v11 = vld [vmem:[#allocation71_spill] sm:$0xff]  ;;  %v7846_v39 = vld [vmem:[#allocation49_spill] sm:$0xff] }
  0xef   : > { %v4366_v28 = vpack.i.bf16 %v985_v7, %v7800_v26  ;;  %v4381_v4 = vpack.i.bf16 %v986_v29, %v7803_v51  ;;  %v5997_v7 = vrot.slane %v829_v55, %v4992_v52  ;;  %v2477_v29 = vcombine.low %v5946_v25, %v5992_v53  ;;  %v7807_v26 = vld [vmem:[#allocation38_spill] sm:$0xff]  ;;  %v7810_v55 = vld [vmem:[#allocation68_spill] sm:$0xff] }
  0xf0   : > { %v7806_v6 = vcombine.high %v7796_v32, %v7797_v47  ;;  %v1291_v51 = vcombine.high %v7807_v26, %v5462_v8  ;;  %v1275_v35 = vcombine.high %v7809_v10, %v7808_v12  ;;  %v1372_v5 = vcombine.low %v5986_v56, %v5966_v45 }
  0xf1   : > { %4367 = vrot.lane.b32.xlu0 %v4366_v28, %s4677_s28  ;;  %v1155_v58 = vcombine.high %v5591_v2, %v5634_v61  ;;  %v1139_v32 = vcombine.high %v5593_v16, %v5636_v49  ;;  %v6019_v47 = vrot.slane %v2477_v29, %v4948_v22  ;;  %v6022_v8 = vrot.slane %v2461_v24, %v4948_v22  ;;  %v6034_v2 = vpop.permute.xlu0 %1855  ;;  %v7815_v49 = vld [vmem:[#allocation35_spill] sm:$0xff]  ;;  %v7816_v61 = vld [vmem:[#allocation32_spill] sm:$0xff] }
  0xf2   : > { %v4376_v19 = vpack.i.bf16 %v849_v30, %v7806_v6  ;;  %4372 = vrot.lane.b32.xlu1 %v4371_v13, %s4673_s18  ;;  %v7811_v30 = vld [vmem:[#allocation69_spill] sm:$0xff]  ;;  %v6027_v12 = vrot.slane %v2445_v57, %v4948_v22  ;;  %v6030_v28 = vrot.slane %v2429_v21, %v4948_v22  ;;  %v6032_v13 = vpop.permute.xlu1 %1859  ;;  %7814 = vst [vmem:[#allocation44_spill] sm:$0xff] %v6034_v2  ;;  %v7817_v24 = vld [vmem:[#allocation36_spill] sm:$0xff] }
  0xf3   : > { %v1203_v10 = vcombine.high %v7811_v30, %v7810_v55  ;;  %7813 = vst [vmem:[#allocation38_spill] sm:$0xff] %v6032_v13  ;;  %v1235_v16 = vcombine.high %v5804_v23, %v5790_v36  ;;  %v1259_v29 = vcombine.high %v7816_v61, %v7815_v49  ;;  %v7818_v6 = vld [vmem:[#allocation33_spill] sm:$0xff]  ;;  %v7819_v55 = vld [vmem:[#allocation50_spill] sm:$0xff]  ;;  %v7820_v30 = vld [vmem:[#allocation47_spill] sm:$0xff]  ;;  %v850_v21 = vcombine.low %v5975_v33, %v5997_v7 }
  0xf4   : > { %7812 = vst [vmem:[#allocation20_spill] sm:$0xff] %v6030_v28  ;;  %v1243_v26 = vcombine.high %v7818_v6, %v7817_v24  ;;  %v1123_v57 = vcombine.high %v7820_v30, %v7819_v55  ;;  %v1107_v44 = vcombine.high %v7822_v54, %v7821_v43  ;;  %v1171_v37 = vcombine.high %v7824_v11, %v7823_v60  ;;  %v7837_v23 = vld [vmem:[#allocation40_spill] sm:$0xff] }
  0xf5   : > { %v2525_v36 = vcombine.low %v6022_v8, %v6019_v47  ;;  %4377 = vrot.lane.b32.xlu0 %v4376_v19, %s4677_s28  ;;  %v6055_v49 = vrot.slane %v1291_v51, %v4948_v22  ;;  %v6058_v61 = vrot.slane %v1275_v35, %v4948_v22  ;;  %v6061_v24 = vrot.slane %v1155_v58, %v4948_v22 }
  0xf6   : > { %4382 = vrot.lane.b32.xlu1 %v4381_v4, %s4678_s30  ;;  %v6064_v43 = vrot.slane %v1139_v32, %v4948_v22  ;;  %v6067_v60 = vrot.slane %v1203_v10, %v4992_v52  ;;  %v2493_v54 = vcombine.low %v6030_v28, %v6027_v12  ;;  %v6071_v11 = vpop.permute.xlu1 %1867  ;;  %v6073_v4 = vpop.permute.xlu0 %1863  ;;  %v4386_v19 = vpack.i.bf16 %v1642_v42, %v1235_v16  ;;  %v7831_v16 = vld [vmem:[#allocation23_spill] sm:$0xff] }
  0xf7   : > { %7825 = vst [vmem:[#allocation39_spill] sm:$0xff] %v6071_v11  ;;  %7826 = vst [vmem:[#allocation68_spill] sm:$0xff] %v6073_v4  ;;  %v4391_v51 = vpack.i.bf16 %v1779_v0, %v1372_v5  ;;  %v6076_v35 = vrot.slane %v1259_v29, %v4948_v22  ;;  %v6079_v58 = vrot.slane %v1243_v26, %v4948_v22  ;;  %v7832_v29 = vld [vmem:[#allocation24_spill] sm:$0xff] }
  0xf8   : > { %v6082_v32 = vrot.slane %v1123_v57, %v4948_v22  ;;  %v1780_v10 = vcombine.high %v5909_v41, %v5915_v38  ;;  %v6087_v6 = vrot.slane %v1107_v44, %v4948_v22  ;;  %v1185_v55 = vrot.slane %v1171_v37, %v4992_v52 }
  0xf9   : > { %v6091_v42 = vrot.slane %v2525_v36, %v4992_v52  ;;  %4387 = vrot.lane.b32.xlu0 %v4386_v19, %s4673_s18  ;;  %v1354_v0 = vcombine.low %v6058_v61, %v6055_v49  ;;  %v1218_v5 = vcombine.low %v6064_v43, %v6061_v24  ;;  %v1373_v41 = vcombine.high %v5986_v56, %v5966_v45 }
  0xfa   : > { %4392 = vrot.lane.b32.xlu1 %v4391_v51, %s4674_s19  ;;  %v1644_v44 = vcombine.high %v5921_v20, %v5931_v9  ;;  %v6104_v38 = vrot.slane %v2493_v54, %v4992_v52  ;;  %v6106_v36 = vpop.permute.xlu1 %1875  ;;  %v6108_v37 = vpop.permute.xlu0 %1871  ;;  %v7833_v26 = vcombine.low %v7831_v16, %v7832_v29  ;;  %v7834_v57 = vcombine.high %v7801_v14, %v7802_v27  ;;  %v7836_v51 = vld [vmem:[#allocation41_spill] sm:$0xff] }
  0xfb   : > { %7827 = vst [vmem:[#allocation69_spill] sm:$0xff] %v6091_v42  ;;  %7829 = vst [vmem:[#allocation32_spill] sm:$0xff] %v6106_v36  ;;  %v7835_v45 = vcombine.high %v5903_v17, %v5874_v1  ;;  %v1236_v19 = vcombine.low %v1185_v55, %v6067_v60  ;;  %v1322_v54 = vcombine.low %v6079_v58, %v6076_v35  ;;  %v7842_v1 = vld [vmem:[#allocation46_spill] sm:$0xff]  ;;  %v7843_v17 = vld [vmem:[#allocation45_spill] sm:$0xff] }
  0xfc   : > { %7828 = vst [vmem:[#allocation35_spill] sm:$0xff] %v6104_v38  ;;  %7830 = vst [vmem:[#allocation36_spill] sm:$0xff] %v6108_v37  ;;  %v4396_v30 = vpack.i.bf16 %v850_v21, %v7833_v26  ;;  %v7838_v25 = vcombine.low %v7836_v51, %v7837_v23  ;;  %v7839_v21 = vld [vmem:[#allocation43_spill] sm:$0xff]  ;;  %v7840_v26 = vld [vmem:[#allocation42_spill] sm:$0xff]  ;;  %v7844_v27 = vcombine.low %v7842_v1, %v7843_v17 }
  0xfd   : > { %v4401_v56 = vpack.i.bf16 %v7835_v45, %v7834_v57  ;;  %v7841_v18 = vcombine.low %v7839_v21, %v7840_v26  ;;  %v1186_v45 = vcombine.low %v6087_v6, %v6082_v32  ;;  %v6154_v3 = vrot.slane %v1218_v5, %v4992_v52 }
  0xfe   : > { %v6126_v53 = vrot.slane %v7838_v25, %v4992_v52  ;;  %v6138_v57 = vrot.slane %v7844_v27, %v4992_v52  ;;  %4397 = vrot.lane.b32.xlu0 %v4396_v30, %s4678_s30  ;;  %v7845_v25 = vld [vmem:[#allocation52_spill] sm:$0xff]  ;;  %v1362_v27 = vrot.slane %v1354_v0, %v4992_v52  ;;  %v4411_v50 = vpack.i.bf16 %v1780_v10, %v1373_v41  ;;  %v6164_v28 = vpop.permute.xlu0 %1879 }
  0xff   : > { %v6132_v14 = vrot.slane %v7841_v18, %v4992_v52  ;;  %4402 = vrot.lane.b32.xlu1 %v4401_v56, %s4679_s8  ;;  %v7847_v59 = vcombine.low %v7845_v25, %v7846_v39  ;;  %v851_v30 = vcombine.high %v5975_v33, %v5997_v7  ;;  %v1919_v56 = vcombine.low %v6032_v13, %v6071_v11  ;;  %v7850_v41 = vld [vmem:[#allocation8_spill] sm:$0xff]  ;;  %v7851_v33 = vld [vmem:[#allocation6_spill] sm:$0xff] }
 0x100   : > { %v1903_v46 = vcombine.low %v6034_v2, %v6073_v4  ;;  %7848 = vst [vmem:[#allocation33_spill] sm:$0xff] %v6164_v28  ;;  %v7849_v0 = vcombine.low %v5921_v20, %v5931_v9  ;;  %v1237_v5 = vcombine.high %v1185_v55, %v6067_v60  ;;  %v1330_v10 = vrot.slane %v1322_v54, %v4992_v52 }
 0x101   : > { %v6148_v18 = vrot.slane %v7847_v59, %v4992_v52  ;;  %v6162_v59 = vpop.permute.xlu1 %1883  ;;  %v2724_v7 = vcombine.low %v7851_v33, %v7850_v41  ;;  %v1935_v2 = vcombine.low %v6108_v37, %v6164_v28  ;;  %v6178_v4 = vrot.slane %v1186_v45, %v4992_v52 }
 0x102   : > { %v4406_v34 = vpack.i.bf16 %v7849_v0, %v1236_v19  ;;  %v1951_v13 = vcombine.low %v6106_v36, %v6162_v59  ;;  %v1781_v20 = vcombine.low %v6126_v53, %v6132_v14  ;;  %v7852_v19 = vcombine.high %v7831_v16, %v7832_v29  ;;  %v6203_v11 = vpop.permute.xlu0 %2245 }
 0x103   : > { %4412 = vrot.lane.b32.xlu1 %v4411_v50, %s4675_s20  ;;  %v1645_v9 = vcombine.low %v6138_v57, %v6148_v18  ;;  %v6190_v55 = vrot.slane %v1935_v2, %v4948_v22  ;;  %v1374_v45 = vcombine.low %v1330_v10, %v1362_v27  ;;  %v6199_v50 = vrot.slane %v1903_v46, %v4948_v22 }
 0x104   : > { %4407 = vrot.lane.b32.xlu0 %v4406_v34, %s4674_s19  ;;  %v6187_v60 = vrot.slane %v1951_v13, %v4948_v22  ;;  %v4416_v54 = vpack.i.bf16 %v851_v30, %v7852_v19  ;;  %v6196_v34 = vrot.slane %v1919_v56, %v4948_v22  ;;  %v4421_v13 = vpack.i.bf16 %v1644_v44, %v1237_v5 }
 0x105   : > { %v6201_v0 = vpop.permute.xlu1 %2249  ;;  %v1238_v2 = vcombine.low %v6178_v4, %v6154_v3  ;;  %v7855_v16 = vcombine.low %v7742_v62, %v7755_v48  ;;  %v2725_v46 = vcombine.high %v7851_v33, %v7850_v41  ;;  %v6218_v30 = vrot.slane %v2724_v7, %v4948_v22 }
 0x106   : > { %v1999_v36 = vcombine.low %v6190_v55, %v6187_v60  ;;  %v1375_v33 = vcombine.high %v1330_v10, %v1362_v27  ;;  %v1782_v7 = vcombine.high %v6126_v53, %v6132_v14  ;;  %v7860_v19 = vcombine.high %v7742_v62, %v7755_v48  ;;  %v6244_v56 = vpop.permute.xlu0 %2253 }
 0x107   : > { %v6213_v29 = vrot.slane %v7855_v16, %v4948_v22  ;;  %4422 = vrot.lane.b32.xlu1 %v4421_v13, %s4675_s20  ;;  %v4426_v28 = vpack.i.bf16 %v1781_v20, %v1374_v45  ;;  %v4431_v44 = vpack.i.bf16 %v1645_v9, %v1238_v2  ;;  %v6247_v27 = vrot.slane %v2725_v46, %v4948_v22 }
 0x108   : > { %4417 = vrot.lane.b32.xlu0 %v4416_v54, %s4679_s8  ;;  %v6238_v5 = vrot.slane %v7860_v19, %v4948_v22  ;;  %v1967_v54 = vcombine.low %v6199_v50, %v6196_v34  ;;  %v7863_v62 = vcombine.high %v7836_v51, %v7837_v23  ;;  %v7864_v14 = vcombine.high %v7839_v21, %v7840_v26  ;;  %v7869_v19 = vld [vmem:[#allocation72_spill] sm:$0xff] }
 0x109   : > { %v6242_v13 = vpop.permute.xlu1 %2257  ;;  %7862 = vst [vmem:[#allocation47_spill] sm:$0xff] %v6247_v27  ;;  %v6266_v20 = vrot.slane %v1999_v36, %v4992_v52  ;;  %v7866_v9 = vcombine.high %v7842_v1, %v7843_v17  ;;  %v7867_v51 = vcombine.high %v7845_v25, %v7846_v39  ;;  %v4436_v26 = vpack.i.bf16 %v1782_v7, %v1375_v33  ;;  %v7870_v33 = vld [vmem:[#allocation65_spill] sm:$0xff] }
 0x10a   : > { %7861 = vst [vmem:[#allocation50_spill] sm:$0xff] %v6238_v5  ;;  %v6255_v48 = vrot.slane %v7863_v62, %v4992_v52  ;;  %v6261_v10 = vrot.slane %v7864_v14, %v4992_v52  ;;  %v1239_v36 = vcombine.high %v6178_v4, %v6154_v3  ;;  %v1646_v45 = vcombine.high %v6138_v57, %v6148_v18  ;;  %v6292_v39 = vpop.permute.xlu0 %2261  ;;  %v7896_v5 = vld [vmem:[#allocation77_spill] sm:$0xff] }
 0x10b   : > { %4432 = vrot.lane.b32.xlu1 %v4431_v44, %s4676_s27  ;;  %7865 = vst [vmem:[#allocation51_spill] sm:$0xff] %v6266_v20  ;;  %v6272_v23 = vrot.slane %v7866_v9, %v4992_v52  ;;  %v6278_v21 = vrot.slane %v7867_v51, %v4992_v52  ;;  %v2309_v1 = vcombine.low %v6201_v0, %v6242_v13 }
 0x10c   : > { %4427 = vrot.lane.b32.xlu0 %v4426_v28, %s4676_s27  ;;  %v1323_v28 = vcombine.high %v6079_v58, %v6076_v35  ;;  %v2293_v17 = vcombine.low %v6203_v11, %v6244_v56  ;;  %v2168_v35 = vcombine.high %v5956_v63, %v5934_v15  ;;  %v6297_v58 = vrot.slane %v1967_v54, %v4992_v52 }
 0x10d   : > { %v6290_v2 = vpop.permute.xlu1 %2265  ;;  %v1355_v57 = vcombine.high %v6058_v61, %v6055_v49  ;;  %v1783_v25 = vcombine.low %v6255_v48, %v6261_v10  ;;  %v1219_v18 = vcombine.high %v6064_v43, %v6061_v24  ;;  %v2056_v46 = vcombine.high %v5673_v31, %v5721_v40  ;;  %v7871_v49 = vld [vmem:[#allocation7_spill] sm:$0xff] }
 0x10e   : > { %7868 = vst [vmem:[#allocation48_spill] sm:$0xff] %v6297_v58  ;;  %v2040_v7 = vcombine.high %v7870_v33, %v7869_v19  ;;  %v7872_v61 = vld [vmem:[#allocation31_spill] sm:$0xff]  ;;  %v1784_v62 = vcombine.high %v6255_v48, %v6261_v10  ;;  %v1337_v31 = vrot.slane %v1323_v28, %v4992_v52  ;;  %v2317_v40 = vrot.slane %v2309_v1, %v4948_v22  ;;  %v6328_v9 = vpop.permute.xlu0 %2269  ;;  %v7874_v19 = vld [vmem:[#allocation28_spill] sm:$0xff] }
 0x10f   : > { %2204 = vrot.lane.b32.xlu1 %v2168_v35, %s4673_s18  ;;  %v2088_v54 = vcombine.high %v7872_v61, %v7871_v49  ;;  %v2301_v43 = vrot.slane %v2293_v17, %v4948_v22  ;;  %v4446_v51 = vpack.i.bf16 %v1646_v45, %v1239_v36  ;;  %v7873_v35 = vld [vmem:[#allocation73_spill] sm:$0xff]  ;;  %v2325_v10 = vcombine.low %v6292_v39, %v6328_v9 }
 0x110   : > { %4437 = vrot.lane.b32.xlu0 %v4436_v26, %s4677_s28  ;;  %v1369_v26 = vrot.slane %v1355_v57, %v4992_v52  ;;  %v2072_v33 = vcombine.high %v7874_v19, %v7873_v35  ;;  %v1187_v28 = vcombine.high %v6087_v6, %v6082_v32  ;;  %v6340_v1 = vrot.slane %v1219_v18, %v4992_v52  ;;  %v7877_v6 = vld [vmem:[#allocation20_spill] sm:$0xff] }
 0x111   : > { %v6326_v14 = vpop.permute.xlu1 %2273  ;;  %v6343_v17 = vrot.slane %v2056_v46, %v4948_v22  ;;  %v2526_v36 = vcombine.high %v6022_v8, %v6019_v47  ;;  %v6349_v45 = vrot.slane %v2040_v7, %v4948_v22  ;;  %v6352_v57 = vrot.slane %v2088_v54, %v4948_v22  ;;  %v7879_v54 = vld [vmem:[#allocation11_spill] sm:$0xff] }
 0x112   : > { %v2341_v48 = vcombine.low %v6290_v2, %v6326_v14  ;;  %v2333_v32 = vrot.slane %v2325_v10, %v4948_v22  ;;  %v2494_v18 = vcombine.high %v7877_v6, %v6027_v12  ;;  %v2357_v46 = vcombine.low %v2301_v43, %v2317_v40  ;;  %v6360_v47 = vpop.permute.xlu0 %3036  ;;  %v7881_v6 = vld [vmem:[#allocation74_spill] sm:$0xff] }
 0x113   : > { %7875 = vst [vmem:[#allocation70_spill] sm:$0xff] %v6343_v17  ;;  %4447 = vrot.lane.b32.xlu1 %v4446_v51, %s4677_s28  ;;  %7876 = vst [vmem:[#allocation71_spill] sm:$0xff] %v6349_v45  ;;  %v2358_v61 = vcombine.high %v2301_v43, %v2317_v40  ;;  %v2032_v8 = vcombine.high %v6297_v58, %v6266_v20  ;;  %v6365_v7 = vrot.slane %v2072_v33, %v4948_v22  ;;  %v7880_v51 = vld [vmem:[#allocation12_spill] sm:$0xff]  ;;  %v7882_v33 = vld [vmem:[#allocation75_spill] sm:$0xff] }
 0x114   : > { %v2349_v49 = vrot.slane %v2341_v48, %v4948_v22  ;;  %v2136_v19 = vcombine.high %v7880_v51, %v7879_v54  ;;  %v6370_v44 = vrot.slane %v1187_v28, %v4992_v52  ;;  %v6373_v12 = vrot.slane %v2526_v36, %v4992_v52  ;;  %v7889_v58 = vld [vmem:[#allocation58_spill] sm:$0xff] }
 0x115   : > { %v6358_v35 = vpop.permute.xlu1 %3040  ;;  %7878 = vst [vmem:[#allocation23_spill] sm:$0xff] %v6365_v7  ;;  %v1376_v40 = vcombine.low %v1337_v31, %v1369_v26  ;;  %v2104_v41 = vcombine.high %v7882_v33, %v7881_v6  ;;  %v1377_v28 = vcombine.high %v1337_v31, %v1369_v26  ;;  %v2119_v36 = vcombine.low %v6349_v45, %v6343_v17 }
 0x116   : > { %v2389_v48 = vcombine.low %v2333_v32, %v2349_v49  ;;  %v2390_v10 = vcombine.high %v2333_v32, %v2349_v49  ;;  %v6389_v32 = vrot.slane %v2494_v18, %v4992_v52  ;;  %v6395_v54 = vrot.slane %v2358_v61, %v4992_v52  ;;  %v7885_v18 = vld [vmem:[#allocation54_spill] sm:$0xff] }
 0x117   : > { %2176 = vrot.lane.b32.xlu1 %v2032_v8, %s4673_s18  ;;  %v6392_v8 = vrot.slane %v2357_v46, %v4992_v52  ;;  %v6404_v31 = vrot.slane %v2136_v19, %v4992_v52  ;;  %v1240_v26 = vcombine.low %v6370_v44, %v6340_v1  ;;  %v7886_v46 = vld [vmem:[#allocation53_spill] sm:$0xff]  ;;  %v2558_v3 = vcombine.high %v6104_v38, %v6091_v42 }
 0x118   : > { %v6381_v4 = vrot.slane %v2389_v48, %v4992_v52  ;;  %v6384_v49 = vrot.slane %v2390_v10, %v4992_v52  ;;  %v6399_v48 = vpop.permute.xlu0 %3044  ;;  %v2151_v10 = vcombine.low %v6365_v7, %v6352_v57  ;;  %v7887_v6 = vcombine.low %v7885_v18, %v7886_v46 }
 0x119   : > { %7884 = vst [vmem:[#allocation41_spill] sm:$0xff] %v6392_v8  ;;  %v6397_v51 = vpop.permute.xlu1 %3048  ;;  %v2559_v19 = vcombine.low %v6389_v32, %v6373_v12  ;;  %v4451_v43 = vpack.i.bf16 %v1783_v25, %v1376_v40  ;;  %v4466_v24 = vpack.i.bf16 %v1784_v62, %v1377_v28  ;;  %v2118_v20 = vrot.slane %v2104_v41, %v4992_v52  ;;  %v7893_v62 = vld [vmem:[#allocation78_spill] sm:$0xff]  ;;  %v7894_v41 = vld [vmem:[#allocation76_spill] sm:$0xff]  ;;  %v7895_v28 = vld [vmem:[#allocation79_spill] sm:$0xff] }
 0x11a   : > { %7883 = vst [vmem:[#allocation24_spill] sm:$0xff] %v6381_v4  ;;  %v6412_v33 = vrot.slane %v7887_v6, %v4992_v52  ;;  %v2422_v61 = vcombine.high %v6392_v8, %v6381_v4  ;;  %v2423_v53 = vcombine.low %v6395_v54, %v6384_v49  ;;  %v7890_v6 = vld [vmem:[#allocation57_spill] sm:$0xff]  ;;  %v1241_v27 = vcombine.high %v6370_v44, %v6340_v1 }
 0x11b   : > { %v7891_v15 = vcombine.low %v7889_v58, %v7890_v6  ;;  %v6436_v25 = vrot.slane %v2119_v36, %v4992_v52  ;;  %v2446_v40 = vcombine.high %v7894_v41, %v7893_v62  ;;  %v2430_v45 = vcombine.high %v7896_v5, %v7895_v28  ;;  %v7899_v36 = vld [vmem:[#allocation22_spill] sm:$0xff]  ;;  %v7900_v5 = vld [vmem:[#allocation17_spill] sm:$0xff]  ;;  %v7902_v62 = vld [vmem:[#allocation36_spill] sm:$0xff] }
 0x11c   : > { %7888 = vst [vmem:[#allocation40_spill] sm:$0xff] %v6412_v33  ;;  %v6431_v37 = vpop.permute.xlu0 %3052  ;;  %v4441_v42 = vpack.i.bf16 %v2422_v61, %v2558_v3  ;;  %v4456_v38 = vpack.i.bf16 %v2423_v53, %v2559_v19  ;;  %v6446_v7 = vrot.slane %v2151_v10, %v4992_v52  ;;  %v7898_v53 = vld [vmem:[#allocation32_spill] sm:$0xff]  ;;  %v2169_v44 = vcombine.low %v2118_v20, %v6404_v31  ;;  %v7901_v19 = vld [vmem:[#allocation33_spill] sm:$0xff]  ;;  %v7903_v41 = vld [vmem:[#allocation19_spill] sm:$0xff] }
 0x11d   : > { %v6427_v63 = vrot.slane %v7891_v15, %v4992_v52  ;;  %v6429_v16 = vpop.permute.xlu1 %3056  ;;  %v7897_v15 = vcombine.low %v6272_v23, %v6278_v21  ;;  %v1952_v3 = vcombine.high %v7898_v53, %v6162_v59  ;;  %v2170_v1 = vcombine.high %v2118_v20, %v6404_v31 }
 0x11e   : > { %4442 = vrot.lane.b32.xlu0 %v4441_v42, %s4673_s18  ;;  %4457 = vrot.lane.b32.xlu1 %v4456_v38, %s4674_s19  ;;  %v2478_v61 = vcombine.high %v7900_v5, %v7899_v36  ;;  %v2342_v10 = vcombine.high %v6290_v2, %v6326_v14  ;;  %v2326_v59 = vcombine.high %v6292_v39, %v6328_v9  ;;  %v7904_v42 = vld [vmem:[#allocation18_spill] sm:$0xff]  ;;  %v7905_v2 = vld [vmem:[#allocation39_spill] sm:$0xff]  ;;  %v7907_v39 = vld [vmem:[#allocation68_spill] sm:$0xff] }
 0x11f   : > { %7892 = vst [vmem:[#allocation43_spill] sm:$0xff] %v6427_v63  ;;  %v4461_v17 = vpack.i.bf16 %v7897_v15, %v1240_v26  ;;  %v1936_v26 = vcombine.high %v7902_v62, %v7901_v19  ;;  %v2462_v28 = vcombine.high %v7904_v42, %v7903_v41  ;;  %v3234_v38 = vcombine.low %v6358_v35, %v6397_v51  ;;  %v7906_v14 = vld [vmem:[#allocation38_spill] sm:$0xff]  ;;  %v7908_v9 = vld [vmem:[#allocation44_spill] sm:$0xff] }
 0x120   : > { %v3218_v20 = vcombine.low %v6360_v47, %v6399_v48  ;;  %v6470_v15 = vpop.permute.xlu0 %3060  ;;  %v1920_v36 = vcombine.high %v7906_v14, %v7905_v2  ;;  %v1904_v5 = vcombine.high %v7908_v9, %v7907_v39  ;;  %v6483_v41 = vrot.slane %v1952_v3, %v4948_v22 }
 0x121   : > { %v6468_v31 = vpop.permute.xlu1 %3064  ;;  %v3250_v62 = vcombine.low %v6431_v37, %v6470_v15  ;;  %v2310_v42 = vcombine.high %v6201_v0, %v6242_v13  ;;  %v2294_v53 = vcombine.high %v6203_v11, %v6244_v56  ;;  %v6492_v2 = vrot.slane %v1936_v26, %v4948_v22 }
 0x122   : > { %v3266_v19 = vcombine.low %v6429_v16, %v6468_v31  ;;  %4452 = vrot.lane.b32.xlu0 %v4451_v43, %s4678_s30  ;;  %4467 = vrot.lane.b32.xlu1 %v4466_v24, %s4679_s8  ;;  %v2000_v14 = vcombine.high %v6190_v55, %v6187_v60  ;;  %v6497_v39 = vrot.slane %v2342_v10, %v4948_v22 }
 0x123   : > { %v6500_v3 = vrot.slane %v2326_v59, %v4948_v22  ;;  %v6503_v0 = vrot.slane %v3234_v38, %v4948_v22  ;;  %v6506_v11 = vrot.slane %v3218_v20, %v4948_v22  ;;  %v6512_v13 = vrot.slane %v3250_v62, %v4948_v22 }
 0x124   : > { %v6509_v56 = vrot.slane %v3266_v19, %v4948_v22  ;;  %v6516_v60 = vpop.permute.xlu0 %3034  ;;  %v6519_v55 = vrot.slane %v2478_v61, %v4948_v22  ;;  %v6522_v43 = vrot.slane %v2462_v28, %v4948_v22  ;;  %v6525_v26 = vrot.slane %v1920_v36, %v4948_v22 }
 0x125   : > { %v6514_v24 = vpop.permute.xlu1 %3038  ;;  %7910 = vst [vmem:[#allocation46_spill] sm:$0xff] %v6516_v60  ;;  %v1968_v10 = vcombine.high %v6199_v50, %v6196_v34  ;;  %v6530_v59 = vrot.slane %v1904_v5, %v4948_v22  ;;  %v6533_v38 = vrot.slane %v2310_v42, %v4948_v22  ;;  %v6536_v20 = vrot.slane %v2294_v53, %v4948_v22 }
 0x126   : > { %7909 = vst [vmem:[#allocation42_spill] sm:$0xff] %v6514_v24  ;;  %2208 = vrot.lane.b32.xlu0 %v2169_v44, %s4674_s19  ;;  %2212 = vrot.lane.b32.xlu1 %v2170_v1, %s4675_s20  ;;  %v6541_v61 = vrot.slane %v2446_v40, %v4948_v22  ;;  %v6544_v28 = vrot.slane %v2430_v45, %v4948_v22 }
 0x127   : > { %v2015_v34 = vcombine.low %v6492_v2, %v6483_v41  ;;  %v6549_v50 = vrot.slane %v2000_v14, %v4992_v52  ;;  %v2405_v53 = vcombine.low %v6500_v3, %v6497_v39  ;;  %v3282_v44 = vcombine.low %v6506_v11, %v6503_v0 }
 0x128   : > { %v3314_v1 = vcombine.low %v6512_v13, %v6509_v56  ;;  %v6559_v36 = vpop.permute.xlu0 %3042  ;;  %v7913_v45 = vcombine.high %v6272_v23, %v6278_v21  ;;  %v2541_v5 = vcombine.low %v6522_v43, %v6519_v55  ;;  %v1982_v42 = vrot.slane %v1968_v10, %v4992_v52 }
 0x129   : > { %v6557_v40 = vpop.permute.xlu1 %3046  ;;  %7912 = vst [vmem:[#allocation52_spill] sm:$0xff] %v6559_v36  ;;  %v3082_v62 = vcombine.low %v6516_v60, %v6559_v36  ;;  %v1983_v14 = vcombine.low %v6530_v59, %v6525_v26  ;;  %v2373_v4 = vcombine.low %v6536_v20, %v6533_v38  ;;  %v2509_v23 = vcombine.low %v6544_v28, %v6541_v61 }
 0x12a   : > { %7911 = vst [vmem:[#allocation45_spill] sm:$0xff] %v6557_v40  ;;  %v4476_v9 = vpack.i.bf16 %v7913_v45, %v1241_v27  ;;  %v3098_v19 = vcombine.low %v6514_v24, %v6557_v40  ;;  %4462 = vrot.lane.b32.xlu0 %v4461_v17, %s4678_s30  ;;  %v2033_v21 = vcombine.low %v1982_v42, %v6549_v50 }
 0x12b   : > { %v2171_v10 = vcombine.low %v6436_v25, %v6446_v7  ;;  %v6585_v45 = vrot.slane %v2015_v34, %v4992_v52  ;;  %v2413_v8 = vrot.slane %v2405_v53, %v4992_v52  ;;  %v6589_v17 = vrot.slane %v3282_v44, %v4992_v52 }
 0x12c   : > { %4477 = vrot.lane.b32.xlu1 %v4476_v9, %s4679_s8  ;;  %v6592_v9 = vrot.slane %v3314_v1, %v4992_v52  ;;  %v6596_v60 = vpop.permute.xlu0 %3050  ;;  %v2424_v36 = vcombine.high %v6395_v54, %v6384_v49  ;;  %v2549_v24 = vrot.slane %v2541_v5, %v4992_v52  ;;  %v6602_v34 = vrot.slane %v3098_v19, %v4948_v22 }
 0x12d   : > { %7914 = vst [vmem:[#allocation49_spill] sm:$0xff] %v6589_v17  ;;  %v6594_v27 = vpop.permute.xlu1 %3054  ;;  %v6605_v53 = vrot.slane %v3082_v62, %v4948_v22  ;;  %v7916_v44 = vcombine.high %v7885_v18, %v7886_v46  ;;  %v2381_v40 = vrot.slane %v2373_v4, %v4992_v52  ;;  %v2560_v49 = vcombine.high %v6389_v32, %v6373_v12 }
 0x12e   : > { %7915 = vst [vmem:[#allocation8_spill] sm:$0xff] %v6592_v9  ;;  %2180 = vrot.lane.b32.xlu0 %v2033_v21, %s4674_s19  ;;  %v1991_v54 = vrot.slane %v1983_v14, %v4992_v52  ;;  %v2517_v5 = vrot.slane %v2509_v23, %v4992_v52  ;;  %v2542_v19 = vcombine.high %v6522_v43, %v6519_v55  ;;  %v7918_v23 = vld [vmem:[#allocation56_spill] sm:$0xff] }
 0x12f   : > { %v6611_v1 = vrot.slane %v7916_v44, %v4992_v52  ;;  %v2406_v18 = vcombine.high %v6500_v3, %v6497_v39  ;;  %v7917_v4 = vcombine.high %v7889_v58, %v7890_v6  ;;  %v4471_v12 = vpack.i.bf16 %v2424_v36, %v2560_v49 }
 0x130   : > { %2216 = vrot.lane.b32.xlu1 %v2171_v10, %s4676_s27  ;;  %v6632_v21 = vpop.permute.xlu0 %3058  ;;  %v2035_v32 = vcombine.low %v1991_v54, %v6585_v45  ;;  %v2426_v14 = vcombine.high %v2381_v40, %v2413_v8  ;;  %v2374_v39 = vcombine.high %v6536_v20, %v6533_v38  ;;  %v3146_v3 = vcombine.low %v6605_v53, %v6602_v34  ;;  %v7919_v38 = vld [vmem:[#allocation55_spill] sm:$0xff] }
 0x131   : > { %v6628_v46 = vrot.slane %v7917_v4, %v4992_v52  ;;  %v6630_v62 = vpop.permute.xlu1 %3062  ;;  %v3114_v6 = vcombine.low %v6596_v60, %v6632_v21  ;;  %v2510_v43 = vcombine.high %v6544_v28, %v6541_v61  ;;  %v2562_v36 = vcombine.high %v2517_v5, %v2549_v24 }
 0x132   : > { %v3130_v58 = vcombine.low %v6594_v27, %v6630_v62  ;;  %4472 = vrot.lane.b32.xlu0 %v4471_v12, %s4675_s20  ;;  %v7920_v20 = vcombine.low %v7918_v23, %v7919_v38  ;;  %v6656_v44 = vrot.slane %v2406_v18, %v4992_v52  ;;  %v2034_v61 = vcombine.high %v1982_v42, %v6549_v50 }
 0x133   : > { %v3122_v4 = vrot.slane %v3114_v6, %v4948_v22  ;;  %v3283_v28 = vcombine.high %v6506_v11, %v6503_v0  ;;  %v3315_v12 = vcombine.high %v6512_v13, %v6509_v56  ;;  %v2425_v38 = vcombine.low %v2381_v40, %v2413_v8  ;;  %v7923_v8 = vld [vmem:[#allocation66_spill] sm:$0xff]  ;;  %v7924_v56 = vld [vmem:[#allocation63_spill] sm:$0xff] }
 0x134   : > { %2188 = vrot.lane.b32.xlu1 %v2035_v32, %s4676_s27  ;;  %v6653_v10 = vrot.slane %v7920_v20, %v4992_v52  ;;  %v3138_v49 = vrot.slane %v3130_v58, %v4948_v22  ;;  %v6667_v55 = vpop.permute.xlu0 %3426  ;;  %v4486_v20 = vpack.i.bf16 %v2426_v14, %v2562_v36  ;;  %v6670_v18 = vrot.slane %v2542_v19, %v4992_v52 }
 0x135   : > { %v6665_v32 = vpop.permute.xlu1 %3430  ;;  %v6673_v58 = vrot.slane %v2374_v39, %v4992_v52  ;;  %v6676_v50 = vrot.slane %v3146_v3, %v4992_v52  ;;  %v2561_v0 = vcombine.low %v2517_v5, %v2549_v24  ;;  %v2958_v11 = vcombine.low %v6611_v1, %v6628_v46 }
 0x136   : > { %v3178_v42 = vcombine.low %v3122_v4, %v3138_v49  ;;  %2184 = vrot.lane.b32.xlu0 %v2034_v61, %s4675_s20  ;;  %v7925_v13 = vcombine.low %v7923_v8, %v7924_v56  ;;  %v6689_v19 = vrot.slane %v2510_v43, %v4992_v52  ;;  %v7928_v24 = vcombine.low %v6218_v30, %v6213_v29 }
 0x137   : > { %7921 = vst [vmem:[#allocation6_spill] sm:$0xff] %v6673_v58  ;;  %7922 = vst [vmem:[#allocation72_spill] sm:$0xff] %v6676_v50  ;;  %v2427_v39 = vcombine.low %v6673_v58, %v6656_v44  ;;  %v6703_v3 = vrot.slane %v3283_v28, %v4992_v52  ;;  %v6706_v6 = vrot.slane %v3315_v12, %v4992_v52 }
 0x138   : > { %4487 = vrot.lane.b32.xlu1 %v4486_v20, %s4677_s28  ;;  %v6686_v40 = vrot.slane %v7925_v13, %v4992_v52  ;;  %v6692_v14 = vrot.slane %v3178_v42, %v4992_v52  ;;  %v6700_v5 = vrot.slane %v7928_v24, %v4992_v52  ;;  %v6710_v36 = vpop.permute.xlu0 %3434  ;;  %v4481_v61 = vpack.i.bf16 %v2425_v38, %v2561_v0 }
 0x139   : > { %v6708_v43 = vpop.permute.xlu1 %3438  ;;  %v2036_v20 = vcombine.high %v1991_v54, %v6585_v45  ;;  %v2563_v13 = vcombine.low %v6689_v19, %v6670_v18  ;;  %v7930_v28 = vcombine.high %v7923_v8, %v7924_v56  ;;  %v7931_v12 = vcombine.high %v6218_v30, %v6213_v29  ;;  %v7932_v45 = vld [vmem:[#allocation23_spill] sm:$0xff] }
 0x13a   : > { %7926 = vst [vmem:[#allocation65_spill] sm:$0xff] %v6686_v40  ;;  %7927 = vst [vmem:[#allocation7_spill] sm:$0xff] %v6692_v14  ;;  %v2152_v54 = vcombine.high %v7932_v45, %v6352_v57  ;;  %v3235_v38 = vcombine.high %v6358_v35, %v6397_v51  ;;  %4482 = vrot.lane.b32.xlu0 %v4481_v61, %s4676_s27  ;;  %v2172_v0 = vcombine.high %v6436_v25, %v6446_v7 }
 0x13b   : > { %7929 = vst [vmem:[#allocation31_spill] sm:$0xff] %v6700_v5  ;;  %v6721_v24 = vrot.slane %v7930_v28, %v4992_v52  ;;  %v6727_v58 = vrot.slane %v7931_v12, %v4992_v52  ;;  %v3219_v8 = vcombine.high %v6360_v47, %v6399_v48  ;;  %v3267_v29 = vcombine.high %v6429_v16, %v6468_v31  ;;  %v7933_v48 = vld [vmem:[#allocation70_spill] sm:$0xff]  ;;  %v7934_v16 = vld [vmem:[#allocation71_spill] sm:$0xff] }
 0x13c   : > { %2192 = vrot.lane.b32.xlu1 %v2036_v20, %s4677_s28  ;;  %v3251_v30 = vcombine.high %v6431_v37, %v6470_v15  ;;  %v4496_v57 = vpack.i.bf16 %v2427_v39, %v2563_v13  ;;  %v3147_v35 = vcombine.high %v6605_v53, %v6602_v34  ;;  %v3179_v51 = vcombine.high %v3122_v4, %v3138_v49  ;;  %v6747_v61 = vpop.permute.xlu0 %3442  ;;  %v7935_v15 = vld [vmem:[#allocation60_spill] sm:$0xff]  ;;  %v7936_v34 = vld [vmem:[#allocation59_spill] sm:$0xff] }
 0x13d   : > { %v6745_v56 = vpop.permute.xlu1 %3446  ;;  %v3347_v7 = vcombine.high %v6589_v17, %v6592_v9  ;;  %v3348_v47 = vcombine.low %v6703_v3, %v6706_v6  ;;  %v2120_v25 = vcombine.high %v7934_v16, %v7933_v48  ;;  %v2821_v37 = vcombine.high %v6686_v40, %v6700_v5  ;;  %v7945_v9 = vld [vmem:[#allocation52_spill] sm:$0xff]  ;;  %v7946_v17 = vld [vmem:[#allocation46_spill] sm:$0xff] }
 0x13e   : > { %v2822_v31 = vcombine.low %v6721_v24, %v6727_v58  ;;  %v7937_v53 = vcombine.low %v7935_v15, %v7936_v34  ;;  %v3624_v4 = vcombine.low %v6665_v32, %v6708_v43  ;;  %v3608_v39 = vcombine.low %v6667_v55, %v6710_v36  ;;  %2220 = vrot.lane.b32.xlu0 %v2172_v0, %s4677_s28 }
 0x13f   : > { %v2166_v20 = vrot.slane %v2152_v54, %v4992_v52  ;;  %v6773_v13 = vrot.slane %v3235_v38, %v4948_v22  ;;  %v6776_v28 = vrot.slane %v3219_v8, %v4948_v22  ;;  %v6779_v12 = vrot.slane %v3267_v29, %v4948_v22 }
 0x140   : > { %v6763_v49 = vrot.slane %v7937_v53, %v4992_v52  ;;  %4497 = vrot.lane.b32.xlu1 %v4496_v57, %s4678_s30  ;;  %v6782_v45 = vrot.slane %v3251_v30, %v4948_v22  ;;  %v6785_v48 = vrot.slane %v3147_v35, %v4992_v52  ;;  %v6788_v0 = vrot.slane %v3179_v51, %v4992_v52  ;;  %v6792_v54 = vpop.permute.xlu0 %3450 }
 0x141   : > { %v6790_v57 = vpop.permute.xlu1 %3454  ;;  %v7938_v38 = vcombine.high %v6412_v33, %v6427_v63  ;;  %v4506_v16 = vpack.i.bf16 %v3348_v47, %v2958_v11  ;;  %v2016_v29 = vcombine.high %v6492_v2, %v6483_v41  ;;  %v3640_v35 = vcombine.low %v6747_v61, %v6792_v54 }
 0x142   : > { %v3656_v30 = vcombine.low %v6745_v56, %v6790_v57  ;;  %v2134_v51 = vrot.slane %v2120_v25, %v4992_v52  ;;  %v1984_v53 = vcombine.high %v6530_v59, %v6525_v26  ;;  %v6807_v42 = vrot.slane %v3624_v4, %v4948_v22 }
 0x143   : > { %v4491_v8 = vpack.i.bf16 %v3347_v7, %v7938_v38  ;;  %v6810_v7 = vrot.slane %v3608_v39, %v4948_v22  ;;  %v3298_v41 = vcombine.low %v6776_v28, %v6773_v13  ;;  %v3330_v2 = vcombine.low %v6782_v45, %v6779_v12 }
 0x144   : > { %4507 = vrot.lane.b32.xlu1 %v4506_v16, %s4674_s19  ;;  %v6819_v11 = vrot.slane %v3656_v30, %v4948_v22  ;;  %v6822_v26 = vrot.slane %v3640_v35, %v4948_v22  ;;  %v6826_v47 = vpop.permute.xlu0 %3424  ;;  %v2173_v25 = vcombine.low %v2134_v51, %v2166_v20  ;;  %v2174_v4 = vcombine.high %v2134_v51, %v2166_v20  ;;  %v7942_v16 = vld [vmem:[#allocation47_spill] sm:$0xff] }
 0x145   : > { %4492 = vrot.lane.b32.xlu0 %v4491_v8, %s4673_s18  ;;  %v6824_v59 = vpop.permute.xlu1 %3428  ;;  %v3211_v39 = vcombine.high %v6676_v50, %v6692_v14  ;;  %v3212_v38 = vcombine.low %v6785_v48, %v6788_v0  ;;  %v7941_v8 = vld [vmem:[#allocation50_spill] sm:$0xff]  ;;  %v2030_v30 = vrot.slane %v2016_v29, %v4992_v52  ;;  %v2960_v35 = vcombine.low %v6653_v10, %v6763_v49  ;;  %v7943_v50 = vld [vmem:[#allocation45_spill] sm:$0xff] }
 0x146   : > { %7939 = vst [vmem:[#allocation73_spill] sm:$0xff] %v6819_v11  ;;  %7940 = vst [vmem:[#allocation28_spill] sm:$0xff] %v6822_v26  ;;  %v2959_v5 = vcombine.high %v6611_v1, %v6628_v46  ;;  %v3672_v20 = vcombine.low %v6810_v7, %v6807_v42  ;;  %v3704_v51 = vcombine.low %v6822_v26, %v6819_v11  ;;  %v7944_v1 = vld [vmem:[#allocation42_spill] sm:$0xff] }
 0x147   : > { %v1998_v40 = vrot.slane %v1984_v53, %v4992_v52  ;;  %v6847_v29 = vrot.slane %v3298_v41, %v4992_v52  ;;  %v6850_v14 = vrot.slane %v3330_v2, %v4992_v52  ;;  %v3099_v46 = vcombine.high %v7944_v1, %v7943_v50  ;;  %v7947_v50 = vld [vmem:[#allocation55_spill] sm:$0xff] }
 0x148   : > { %2228 = vrot.lane.b32.xlu1 %v2174_v4, %s4679_s8  ;;  %v3083_v33 = vcombine.high %v7946_v17, %v7945_v9  ;;  %v3131_v63 = vcombine.high %v6594_v27, %v6630_v62  ;;  %v6862_v53 = vpop.permute.xlu0 %3432  ;;  %v4501_v41 = vpack.i.bf16 %v3211_v39, %v2821_v37  ;;  %v4516_v26 = vpack.i.bf16 %v3212_v38, %v2822_v31 }
 0x149   : > { %2224 = vrot.lane.b32.xlu0 %v2173_v25, %s4678_s30  ;;  %v3115_v25 = vcombine.high %v6596_v60, %v6632_v21  ;;  %v6860_v4 = vpop.permute.xlu1 %3436  ;;  %v2037_v2 = vcombine.low %v1998_v40, %v2030_v30  ;;  %v2961_v11 = vcombine.high %v6653_v10, %v6763_v49  ;;  %v7948_v17 = vcombine.high %v7918_v23, %v7947_v50 }
 0x14a   : > { %v7949_v60 = vcombine.high %v7935_v15, %v7936_v34  ;;  %v6879_v62 = vrot.slane %v3672_v20, %v4992_v52  ;;  %v6882_v21 = vrot.slane %v3704_v51, %v4992_v52  ;;  %v2038_v10 = vcombine.high %v1998_v40, %v2030_v30  ;;  %v7950_v40 = vld [vmem:[#allocation6_spill] sm:$0xff] }
 0x14b   : > { %v6870_v9 = vrot.slane %v7948_v17, %v4992_v52  ;;  %v3299_v23 = vcombine.high %v6776_v28, %v6773_v13  ;;  %v3331_v37 = vcombine.high %v6782_v45, %v6779_v12  ;;  %v3113_v31 = vrot.slane %v3099_v46, %v4948_v22 }
 0x14c   : > { %v6876_v27 = vrot.slane %v7949_v60, %v4992_v52  ;;  %4517 = vrot.lane.b32.xlu1 %v4516_v26, %s4674_s19  ;;  %v3097_v15 = vrot.slane %v3083_v33, %v4948_v22  ;;  %v3145_v34 = vrot.slane %v3131_v63, %v4948_v22  ;;  %v3129_v49 = vrot.slane %v3115_v25, %v4948_v22  ;;  %v6896_v38 = vpop.permute.xlu0 %3440 }
 0x14d   : > { %4502 = vrot.lane.b32.xlu0 %v4501_v41, %s4673_s18  ;;  %v6894_v39 = vpop.permute.xlu1 %3444  ;;  %v2428_v26 = vcombine.high %v7950_v40, %v6656_v44  ;;  %v3350_v13 = vcombine.low %v6847_v29, %v6850_v14  ;;  %v2564_v28 = vcombine.high %v6689_v19, %v6670_v18  ;;  %v3349_v33 = vcombine.high %v6703_v3, %v6706_v6  ;;  %v7951_v6 = vld [vmem:[#allocation67_spill] sm:$0xff] }
 0x14e   : > { %v2823_v63 = vcombine.high %v6721_v24, %v6727_v58  ;;  %v2962_v12 = vcombine.low %v6870_v9, %v6876_v27  ;;  %v3488_v45 = vcombine.low %v6824_v59, %v6860_v4  ;;  %v3472_v44 = vcombine.low %v6826_v47, %v6862_v53  ;;  %v7952_v24 = vld [vmem:[#allocation64_spill] sm:$0xff] }
 0x14f   : > { %v3736_v18 = vcombine.low %v6879_v62, %v6882_v21  ;;  %v3313_v19 = vrot.slane %v3299_v23, %v4992_v52  ;;  %v3345_v58 = vrot.slane %v3331_v37, %v4992_v52  ;;  %v3162_v3 = vcombine.low %v3097_v15, %v3113_v31 }
 0x150   : > { %2200 = vrot.lane.b32.xlu1 %v2038_v10, %s4679_s8  ;;  %v7953_v30 = vcombine.low %v7951_v6, %v7952_v24  ;;  %v3194_v51 = vcombine.low %v3129_v49, %v3145_v34  ;;  %v6928_v46 = vpop.permute.xlu0 %3448  ;;  %v4511_v25 = vpack.i.bf16 %v2428_v26, %v2564_v28  ;;  %v4531_v41 = vpack.i.bf16 %v3350_v13, %v2960_v35 }
 0x151   : > { %2196 = vrot.lane.b32.xlu0 %v2037_v2, %s4678_s30  ;;  %v6926_v1 = vpop.permute.xlu1 %3452  ;;  %v3351_v2 = vcombine.high %v6847_v29, %v6850_v14  ;;  %v3163_v50 = vcombine.high %v3097_v15, %v3113_v31  ;;  %v3504_v60 = vcombine.low %v6896_v38, %v6928_v46  ;;  %v7954_v10 = vcombine.low %v7942_v16, %v7941_v8 }
 0x152   : > { %v6924_v20 = vrot.slane %v7953_v30, %v4992_v52  ;;  %v3520_v17 = vcombine.low %v6894_v39, %v6926_v1  ;;  %v6943_v37 = vrot.slane %v3488_v45, %v4948_v22  ;;  %v6946_v35 = vrot.slane %v3472_v44, %v4948_v22 }
 0x153   : > { %v6940_v23 = vrot.slane %v7954_v10, %v4992_v52  ;;  %v4521_v14 = vpack.i.bf16 %v3349_v33, %v2959_v5  ;;  %v3170_v29 = vrot.slane %v3162_v3, %v4992_v52  ;;  %v6955_v15 = vrot.slane %v3504_v60, %v4948_v22 }
 0x154   : > { %4532 = vrot.lane.b32.xlu1 %v4531_v41, %s4676_s27  ;;  %v6952_v31 = vrot.slane %v3520_v17, %v4948_v22  ;;  %v3352_v40 = vcombine.low %v3313_v19, %v3345_v58  ;;  %v3195_v26 = vcombine.high %v3129_v49, %v3145_v34  ;;  %v3202_v13 = vrot.slane %v3194_v51, %v4992_v52  ;;  %v6958_v28 = vpop.permute.xlu0 %4327 }
 0x155   : > { %4512 = vrot.lane.b32.xlu0 %v4511_v25, %s4679_s8  ;;  %v6960_v45 = vpop.permute.xlu1 %4332  ;;  %v4541_v44 = vpack.i.bf16 %v3351_v2, %v2961_v11  ;;  %v3213_v5 = vcombine.high %v6785_v48, %v6788_v0  ;;  %v2963_v33 = vcombine.high %v6870_v9, %v6876_v27  ;;  %v3536_v3 = vcombine.low %v6946_v35, %v6943_v37 }
 0x156   : > { %v3568_v30 = vcombine.low %v6955_v15, %v6952_v31  ;;  %v7955_v11 = vcombine.high %v7951_v6, %v7952_v24  ;;  %v3177_v48 = vrot.slane %v3163_v50, %v4992_v52  ;;  %v2824_v0 = vcombine.low %v6924_v20, %v6940_v23 }
 0x157   : > { %v3353_v9 = vcombine.high %v3313_v19, %v3345_v58  ;;  %v7956_v27 = vcombine.high %v7942_v16, %v7941_v8  ;;  %v3209_v51 = vrot.slane %v3195_v26, %v4992_v52  ;;  %v4526_v2 = vpack.i.bf16 %v3213_v5, %v2823_v63 }
 0x158   : > { %4542 = vrot.lane.b32.xlu1 %v4541_v44, %s4677_s28  ;;  %v2787_v34 = vrot.slane %v7955_v11, %v4992_v52  ;;  %v6984_v25 = vpop.permute.xlu0 %4337  ;;  %v4551_v6 = vpack.i.bf16 %v3352_v40, %v2962_v12  ;;  %v3214_v24 = vcombine.low %v3170_v29, %v3202_v13  ;;  %v3625_v50 = vcombine.high %v6665_v32, %v6708_v43 }
 0x159   : > { %4522 = vrot.lane.b32.xlu0 %v4521_v14, %s4675_s20  ;;  %v2819_v49 = vrot.slane %v7956_v27, %v4992_v52  ;;  %v6986_v41 = vpop.permute.xlu1 %4342  ;;  %v3609_v19 = vcombine.high %v6667_v55, %v6710_v36  ;;  %v3657_v58 = vcombine.high %v6745_v56, %v6790_v57  ;;  %v3641_v8 = vcombine.high %v6747_v61, %v6792_v54  ;;  %v7957_v56 = vld [vmem:[#allocation73_spill] sm:$0xff]  ;;  %v7958_v61 = vld [vmem:[#allocation28_spill] sm:$0xff] }
 0x15a   : > { %v6997_v16 = vrot.slane %v3536_v3, %v4992_v52  ;;  %v7000_v17 = vrot.slane %v3568_v30, %v4992_v52  ;;  %v3673_v32 = vcombine.high %v6810_v7, %v6807_v42  ;;  %v4561_v55 = vpack.i.bf16 %v3353_v9, %v2963_v33 }
 0x15b   : > { %v2825_v43 = vcombine.high %v6924_v20, %v6940_v23  ;;  %v2827_v36 = vcombine.high %v2787_v34, %v2819_v49  ;;  %v3705_v57 = vcombine.high %v7958_v61, %v7957_v56  ;;  %v4536_v12 = vpack.i.bf16 %v3214_v24, %v2824_v0 }
 0x15c   : > { %4552 = vrot.lane.b32.xlu1 %v4551_v6, %s4678_s30  ;;  %v7010_v54 = vpop.permute.xlu0 %4347  ;;  %v3215_v60 = vcombine.high %v3170_v29, %v3202_v13  ;;  %v3217_v10 = vcombine.high %v3177_v48, %v3209_v51  ;;  %v3639_v14 = vrot.slane %v3625_v50, %v4948_v22  ;;  %v3623_v40 = vrot.slane %v3609_v19, %v4948_v22 }
 0x15d   : > { %4527 = vrot.lane.b32.xlu0 %v4526_v2, %s4675_s20  ;;  %v7012_v63 = vpop.permute.xlu1 %4352  ;;  %v3671_v42 = vrot.slane %v3657_v58, %v4948_v22  ;;  %v3655_v7 = vrot.slane %v3641_v8, %v4948_v22  ;;  %v3600_v20 = vcombine.low %v6997_v16, %v7000_v17  ;;  %v3687_v23 = vrot.slane %v3673_v32, %v4992_v52 }
 0x15e   : > { %v3489_v29 = vcombine.high %v6824_v59, %v6860_v4  ;;  %v3473_v26 = vcombine.high %v6826_v47, %v6862_v53  ;;  %v2826_v13 = vcombine.low %v2787_v34, %v2819_v49  ;;  %v3719_v44 = vrot.slane %v3705_v57, %v4992_v52 }
 0x15f   : > { %v4546_v3 = vpack.i.bf16 %v3215_v60, %v2825_v43  ;;  %v4566_v30 = vpack.i.bf16 %v3217_v10, %v2827_v36  ;;  %v3216_v11 = vcombine.low %v3177_v48, %v3209_v51  ;;  %v3688_v0 = vcombine.low %v3623_v40, %v3639_v14 }
 0x160   : > { %4562 = vrot.lane.b32.xlu1 %v4561_v55, %s4679_s8  ;;  %v7028_v5 = vpop.permute.xlu0 %4357  ;;  %v3720_v9 = vcombine.low %v3655_v7, %v3671_v42  ;;  %v3689_v27 = vcombine.high %v3623_v40, %v3639_v14  ;;  %v3721_v2 = vcombine.high %v3655_v7, %v3671_v42  ;;  %v7035_v59 = vrot.slane %v3489_v29, %v4948_v22  ;;  %v7960_v29 = vld [vmem:[#allocation27_spill] sm:$0xff] }
 0x161   : > { %4537 = vrot.lane.b32.xlu0 %v4536_v12, %s4676_s27  ;;  %v7030_v33 = vpop.permute.xlu1 %4362  ;;  %v7038_v47 = vrot.slane %v3473_v26, %v4948_v22  ;;  %v3521_v4 = vcombine.high %v6894_v39, %v6926_v1  ;;  %v3505_v53 = vcombine.high %v6896_v38, %v6928_v46  ;;  %v4556_v49 = vpack.i.bf16 %v3216_v11, %v2826_v13 }
 0x162   : > { %v3738_v51 = vcombine.low %v3687_v23, %v3719_v44  ;;  %v7049_v6 = vrot.slane %v3688_v0, %v4992_v52  ;;  %v7052_v24 = vrot.slane %v3720_v9, %v4992_v52  ;;  %v7055_v39 = vrot.slane %v3689_v27, %v4992_v52 }
 0x163   : > { %v7058_v38 = vrot.slane %v3721_v2, %v4992_v52  ;;  %v3537_v1 = vcombine.high %v6946_v35, %v6943_v37  ;;  %v3552_v46 = vcombine.low %v7038_v47, %v7035_v59  ;;  %v7067_v50 = vrot.slane %v3521_v4, %v4948_v22 }
 0x164   : > { %4567 = vrot.lane.b32.xlu1 %v4566_v30, %s4679_s8  ;;  %v7044_v34 = vpop.permute.xlu0 %4367  ;;  %v7070_v19 = vrot.slane %v3505_v53, %v4948_v22  ;;  %v3569_v58 = vcombine.high %v6955_v15, %v6952_v31  ;;  %v3737_v35 = vcombine.high %v6879_v62, %v6882_v21  ;;  %v3739_v32 = vcombine.high %v3687_v23, %v3719_v44  ;;  %v7959_v23 = vld [vmem:[#allocation30_spill] sm:$0xff]  ;;  %v7962_v44 = vld [vmem:[#allocation9_spill] sm:$0xff] }
 0x165   : > { %4547 = vrot.lane.b32.xlu0 %v4546_v3, %s4677_s28  ;;  %v7046_v48 = vpop.permute.xlu1 %4372  ;;  %v4330_v55 = vunpack.i.h.bf16 %v6958_v28  ;;  %v4329_v43 = vunpack.i.l.bf16 %v6958_v28  ;;  %v3740_v22 = vcombine.low %v7049_v6, %v7052_v24  ;;  %v3741_v36 = vcombine.high %v7049_v6, %v7052_v24 }
 0x166   : > { %v7085_v31 = vrot.slane %v3537_v1, %v4992_v52  ;;  %v4340_v15 = vunpack.i.h.bf16 %v6984_v25  ;;  %v4339_v56 = vunpack.i.l.bf16 %v6984_v25  ;;  %v3742_v28 = vcombine.low %v7055_v39, %v7058_v38 }
 0x167   : > { %v7094_v61 = vrot.slane %v3552_v46, %v4992_v52  ;;  %v3584_v57 = vcombine.low %v7070_v19, %v7067_v50  ;;  %v4350_v12 = vunpack.i.h.bf16 %v7010_v54  ;;  %v4349_v60 = vunpack.i.l.bf16 %v7010_v54  ;;  %v7963_v54 = vld [vmem:[#allocation10_spill] sm:$0xff] }
 0x168   : > { %3777 = vrot.lane.b32.xlu1 %v3738_v51, %s4674_s19  ;;  %v7074_v8 = vpop.permute.xlu0 %4377  ;;  %v3583_v10 = vrot.slane %v3569_v58, %v4992_v52  ;;  %v4360_v25 = vunpack.i.h.bf16 %v7028_v5  ;;  %v4359_v14 = vunpack.i.l.bf16 %v7028_v5  ;;  %v3601_v7 = vcombine.high %v6997_v16, %v7000_v17  ;;  %v3815_v17 = vld [vmem:[%s7483_s1 + $0x8] sm:$0xff] }
 0x169   : > { %4557 = vrot.lane.b32.xlu0 %v4556_v49, %s4678_s30  ;;  %v4383_v37 = vpop.permute.xlu1 %4382  ;;  %v7961_v26 = vcombine.low %v7959_v23, %v7960_v29  ;;  %v7964_v3 = vcombine.low %v7962_v44, %v7963_v54  ;;  %v4370_v11 = vunpack.i.h.bf16 %v7044_v34  ;;  %v4369_v5 = vunpack.i.l.bf16 %v7044_v34  ;;  %v7965_v29 = vld [vmem:[#allocation37_spill] sm:$0xff]  ;;  %v7969_v54 = vld [vmem:[#allocation15_spill] sm:$0xff] }
 0x16a   : > { %v4385_v27 = vunpack.i.h.bf16 %v4383_v37  ;;  %v4384_v2 = vunpack.i.l.bf16 %v4383_v37  ;;  %v4335_v4 = vunpack.i.h.bf16 %v6960_v45  ;;  %v4334_v53 = vunpack.i.l.bf16 %v6960_v45  ;;  %v7968_v44 = vld [vmem:[#allocation13_spill] sm:$0xff] }
 0x16b   : > { %v1051_v13 = vsel %vm631_vm2, %v7961_v26, %v4330_v55  ;;  %v645_v30 = vsel %vm631_vm2, %v7964_v3, %v4329_v43  ;;  %v7128_v34 = vrot.slane %v3584_v57, %v4992_v52  ;;  %v3602_v58 = vcombine.low %v7085_v31, %v3583_v10  ;;  %v7966_v26 = vld [vmem:[#allocation34_spill] sm:$0xff] }
 0x16c   : > { %3781 = vrot.lane.b32.xlu1 %v3739_v32, %s4675_s20  ;;  %v7103_v40 = vpop.permute.xlu0 %4387  ;;  %v646_v0 = vsel %vm633_vm3, %v645_v30, %v4339_v56  ;;  %v1052_v9 = vsel %vm633_vm3, %v1051_v13, %v4340_v15  ;;  %v4345_v55 = vunpack.i.h.bf16 %v6986_v41  ;;  %v4344_v43 = vunpack.i.l.bf16 %v6986_v41 }
 0x16d   : > { %3773 = vrot.lane.b32.xlu0 %v3737_v35, %s4673_s18  ;;  %v7105_v42 = vpop.permute.xlu1 %4392  ;;  %v647_v49 = vsel %vm635_vm4, %v646_v0, %v4349_v60  ;;  %v1053_v51 = vsel %vm635_vm4, %v1052_v9, %v4350_v12  ;;  %v4355_v56 = vunpack.i.h.bf16 %v7012_v63  ;;  %v4354_v57 = vunpack.i.l.bf16 %v7012_v63 }
 0x16e   : > { %v648_v6 = vsel %vm637_vm5, %v647_v49, %v4359_v14  ;;  %v1054_v24 = vsel %vm637_vm5, %v1053_v51, %v4360_v25  ;;  %v4365_v25 = vunpack.i.h.bf16 %v7030_v33  ;;  %v4364_v41 = vunpack.i.l.bf16 %v7030_v33 }
 0x16f   : > { %v649_v32 = vsel %vm639_vm6, %v648_v6, %v4369_v5  ;;  %v1055_v45 = vsel %vm639_vm6, %v1054_v24, %v4370_v11  ;;  %v7967_v13 = vcombine.low %v7965_v29, %v7966_v26  ;;  %v7970_v3 = vcombine.low %v7968_v44, %v7969_v54 }
 0x170   : > { %3785 = vrot.lane.b32.xlu1 %v3740_v22, %s4676_s27  ;;  %v4398_v1 = vpop.permute.xlu0 %4397  ;;  %v650_v22 = vsel %vm641_vm7, %v649_v32, %v4384_v2  ;;  %v1056_v15 = vsel %vm641_vm7, %v1055_v45, %v4385_v27  ;;  %v4380_v11 = vunpack.i.h.bf16 %v7074_v8  ;;  %v4379_v33 = vunpack.i.l.bf16 %v7074_v8 }
 0x171   : > { %3745 = vrot.lane.b32.xlu0 %v3601_v7, %s4673_s18  ;;  %v4403_v46 = vpop.permute.xlu1 %4402  ;;  %v1044_v63 = vsel %vm631_vm2, %v7967_v13, %v4335_v4  ;;  %v632_v30 = vsel %vm631_vm2, %v7970_v3, %v4334_v53  ;;  %v3553_v9 = vcombine.high %v7038_v47, %v7035_v59  ;;  %v3743_v8 = vcombine.high %v7055_v39, %v7058_v38 }
 0x172   : > { %v4405_v37 = vunpack.i.h.bf16 %v4403_v46  ;;  %v4404_v35 = vunpack.i.l.bf16 %v4403_v46  ;;  %v634_v5 = vsel %vm633_vm3, %v632_v30, %v4344_v43  ;;  %v1045_v0 = vsel %vm633_vm3, %v1044_v63, %v4345_v55  ;;  %v3816_v55 = vld [vmem:[%s7484_s2] sm:$0xff] }
 0x173   : > { %v636_v27 = vsel %vm635_vm4, %v634_v5, %v4354_v57  ;;  %v1046_v2 = vsel %vm635_vm4, %v1045_v0, %v4355_v56  ;;  %v3585_v4 = vcombine.high %v7070_v19, %v7067_v50  ;;  %v3604_v59 = vcombine.low %v7094_v61, %v7128_v34  ;;  %v3817_v57 = vld [vmem:[%s7484_s2 + $0x8] sm:$0xff] }
 0x174   : > { %3789 = vrot.lane.b32.xlu1 %v3741_v36, %s4677_s28  ;;  %v651_v12 = vsel %vm643_vm8, %v650_v22, %v4404_v35  ;;  %v1057_v60 = vsel %vm643_vm8, %v1056_v15, %v4405_v37  ;;  %v3603_v36 = vcombine.high %v7085_v31, %v3583_v10  ;;  %v4400_v31 = vunpack.i.h.bf16 %v4398_v1  ;;  %v7973_v0 = vld [vmem:[#allocation62_spill] sm:$0xff] }
 0x175   : > { %3749 = vrot.lane.b32.xlu0 %v3602_v58, %s4674_s19  ;;  %v7149_v7 = vpop.permute.xlu1 %4412  ;;  %v4228_v23 = vpack.c.bf16 %v1057_v60, %v651_v12  ;;  %v4399_v10 = vunpack.i.l.bf16 %v4398_v1  ;;  %v638_v53 = vsel %vm637_vm5, %v636_v27, %v4364_v41  ;;  %v1047_v49 = vsel %vm637_vm5, %v1046_v2, %v4365_v25  ;;  %v3919_v12 = vld [vmem:[%s7487_s5 + $0x8] sm:$0xff]  ;;  %v7971_v41 = vld [vmem:[#allocation29_spill] sm:$0xff]  ;;  %s266_s19 = sand.u32 1, %s4651_s22  }
 0x176   : > { %v7147_v14 = vpop.permute.xlu0 %4407  ;;  %v640_v47 = vsel %vm639_vm6, %v638_v53, %v4379_v33  ;;  %v1048_v6 = vsel %vm639_vm6, %v1047_v49, %v4380_v11  ;;  %v4680_v46 = vmov 0.0   ;;  %v3567_v58 = vrot.slane %v3553_v9, %v4992_v52  ;;  %s7435_s13 = scalar_lea.sflag [#allocation3], %s266_s19 }
 0x177   : > { %4229 = vmatprep.subr.bf16.mxu0 %v4228_v23  ;;  %v642_v39 = vsel %vm641_vm7, %v640_v47, %v4399_v10  ;;  %v1049_v38 = vsel %vm641_vm7, %v1048_v6, %v4400_v31  ;;  %3899 = vmatprep.mubr.f32.mxu0 %v4680_v46  ;;  %v3599_v37 = vrot.slane %v3585_v4, %v4992_v52  ;;  %v4681_v15 = vmov 0   ;;  %v3918_v52 = vld [vmem:[%s7487_s5] sm:$0xff] }
 0x178   : > { %3793 = vrot.lane.b32.xlu1 %v3742_v28, %s4678_s30  ;;  %v3605_v32 = vcombine.high %v7094_v61, %v7128_v34  ;;  %4000 = vmatprep.mubr.f32.mxu1 %v4680_v46  ;;  %v4375_v29 = vunpack.i.h.bf16 %v7046_v48  ;;  %v4374_v26 = vunpack.i.l.bf16 %v7046_v48  ;;  %v4395_v13 = vunpack.i.h.bf16 %v7105_v42  ;;  %v7974_v31 = vld [vmem:[#allocation61_spill] sm:$0xff] }
 0x179   : > { %3753 = vrot.lane.b32.xlu0 %v3603_v36, %s4675_s20  ;;  %v7176_v28 = vpop.permute.xlu1 %4422  ;;  %v3606_v22 = vcombine.low %v3567_v58, %v3599_v37  ;;  %4571 = vset.pattern.permute.xlu1 %v4681_v15  ;;  %v3607_v61 = vcombine.high %v3567_v58, %v3599_v37  ;;  %v7972_v36 = vld [vmem:[#allocation25_spill] sm:$0xff]  ;;  %v4394_v63 = vunpack.i.l.bf16 %v7105_v42  ;;  %v4415_v44 = vunpack.i.h.bf16 %v7149_v7  ;;  %s4214_s20 = sshll.u32 %s266_s19, 5 }
 0x17a   : > { %v4418_v51 = vpop.permute.xlu0 %4417  ;;  %4572 = vset.pattern.permute.xlu0 %v4681_v15  ;;  %v1777_v23 = vcombine.low %v7972_v36, %v7971_v41  ;;  %v4414_v54 = vunpack.i.l.bf16 %v7149_v7  ;;  %v7975_v10 = vcombine.low %v7973_v0, %v7974_v31  ;;  %v7976_v7 = vld [vmem:[#allocation16_spill] sm:$0xff]  ;;  %v4410_v58 = vunpack.i.h.bf16 %v7147_v14  ;;  %v7978_v41 = vld [vmem:[#allocation5_spill] sm:$0xff]  ;;  %v7979_v36 = vld [vmem:[#allocation26_spill] sm:$0xff] }
 0x17b   : > { %v4420_v24 = vunpack.i.h.bf16 %v4418_v51  ;;  %v4419_v1 = vunpack.i.l.bf16 %v4418_v51  ;;  %v4390_v51 = vunpack.i.h.bf16 %v7103_v40  ;;  %v4409_v37 = vunpack.i.l.bf16 %v7147_v14 }
 0x17c   : > { %3797 = vrot.lane.b32.xlu1 %v3743_v8, %s4679_s8  ;;  %v1848_v5 = vsel %vm631_vm2, %v1777_v23, %v4375_v29  ;;  %v1441_v48 = vsel %vm631_vm2, %v7975_v10, %v4374_v26  ;;  %v7977_v8 = vld [vmem:[#allocation14_spill] sm:$0xff] }
 0x17d   : > { %3757 = vrot.lane.b32.xlu0 %v3604_v59, %s4676_s27  ;;  %v644_v50 = vsel %vm643_vm8, %v642_v39, %v4419_v1  ;;  %v1050_v19 = vsel %vm643_vm8, %v1049_v38, %v4420_v24  ;;  %v7191_v35 = vpop.permute.xlu1 %4432  ;;  %v1442_v9 = vsel %vm633_vm3, %v1441_v48, %v4394_v63  ;;  %v1849_v42 = vsel %vm633_vm3, %v1848_v5, %v4395_v13  ;;  %s268_s27 = scalar_lea.vmem [#allocation2], %s4214_s20 }
 0x17e   : > { %v4230_v45 = vpack.c.bf16 %v1050_v19, %v644_v50  ;;  %v4428_v34 = vpop.permute.xlu0 %4427  ;;  %v1641_v4 = vcombine.low %v7977_v8, %v7976_v7  ;;  %v1443_v53 = vsel %vm635_vm4, %v1442_v9, %v4414_v54  ;;  %v1850_v49 = vsel %vm635_vm4, %v1849_v42, %v4415_v44 }
 0x17f   : > { %v4430_v3 = vunpack.i.h.bf16 %v4428_v34  ;;  %v4429_v30 = vunpack.i.l.bf16 %v4428_v34  ;;  %v4389_v59 = vunpack.i.l.bf16 %v7103_v40  ;;  %v4425_v40 = vunpack.i.h.bf16 %v7176_v28 }
 0x180   : > { %4231 = vmatpush1.bf16.msra.mxu0 %v4230_v45  ;;  %3820 = vperm.xlu1 %4571, %v3816_v55   ;;  %v4424_v55 = vunpack.i.l.bf16 %v7176_v28  ;;  %v7980_v28 = vcombine.low %v7978_v41, %v7979_v36  ;;  %v7987_v36 = vld [vmem:[#allocation35_spill] sm:$0xff] }
 0x181   : > { %3761 = vrot.lane.b32.xlu0 %v3605_v32, %s4677_s28  ;;  %v7200_v43 = vpop.permute.xlu1 %2204  ;;  %v1444_v47 = vsel %vm637_vm5, %v1443_v53, %v4429_v30  ;;  %v1851_v6 = vsel %vm637_vm5, %v1850_v49, %v4430_v3  ;;  %s4127_s28 = sshll.u32 %s268_s27, 4  ;;  %s7428_s28 = int_to_ptr.vmem [resolvable:$true] %s4127_s28 }
 0x182   : > { %v4438_v60 = vpop.permute.xlu0 %4437  ;;  %v1434_v23 = vsel %vm631_vm2, %v7980_v28, %v4389_v59  ;;  %v7988_v28 = vld [vmem:[#allocation69_spill] sm:$0xff]  ;;  %s4589_s14 = scalar_lea.vmem %s7428_s28, 512 }
 0x183   : > { %v4440_v27 = vunpack.i.h.bf16 %v4438_v60  ;;  %v4439_v2 = vunpack.i.l.bf16 %v4438_v60  ;;  %v1841_v60 = vsel %vm631_vm2, %v1641_v4, %v4390_v51  ;;  %v1435_v26 = vsel %vm633_vm3, %v1434_v23, %v4409_v37  ;;  %p4590_p12 = scmp.ne.s32.totalorder %s7428_s28, %s4589_s14 }
 0x184   : > { %3922 = vperm.xlu1 %4571, %v3918_v52   ;;  %v4435_v52 = vunpack.i.h.bf16 %v7191_v35  ;;  %v1842_v13 = vsel %vm633_vm3, %v1841_v60, %v4410_v58  ;;  %v1436_v54 = vsel %vm635_vm4, %v1435_v26, %v4424_v55  ;;  %v7982_v55 = vld [vmem:[#allocation80_spill] sm:$0xff] }
 0x185   : > { %3765 = vrot.lane.b32.xlu0 %v3606_v22, %s4678_s30  ;;  %v7206_v56 = vpop.permute.xlu1 %4447  ;;  %v1445_v32 = vsel %vm639_vm6, %v1444_v47, %v4439_v2  ;;  %v1852_v45 = vsel %vm639_vm6, %v1851_v6, %v4440_v27  ;;  %v1843_v44 = vsel %vm635_vm4, %v1842_v13, %v4425_v40  ;;  %v7981_v40 = vld [vmem:[#allocation21_spill] sm:$0xff]  ;;  %s4227_s30 = sshll.u32 %s4659_s24, 9  ;;  %p4591_p13 = pnand %p4590_p12, %p4759_p4 }
 0x186   : > { %v4449_v63 = vunpack.i.l.bf16 %v7206_v56  ;;  %v1844_v30 = vsel %vm637_vm5, %v1843_v44, %v4435_v52  ;;  %v7984_v52 = vld [vmem:[#allocation41_spill] sm:$0xff]  ;;  %v7991_v44 = vld [vmem:[#allocation51_spill] sm:$0xff]  ;;  %s7433_s12 = scalar_lea.hbm %s7488_s6, %s4227_s30  ;;  %s4682_s24 = smov [#allocation2]  }
 0x187   : > { %p4592_p0 = pneg %p4591_p13  ;;  %s4593_s15 = sshll.u32 %s4682_s24, 4  ;;  %s4594_s15 = int_to_ptr.vmem [resolvable:$false] %s4593_s15 }
 0x188   : > { %3927 = vperm.xlu1 %4571, %v3919_v12   ;;  %s4595_s16 = scalar_lea.vmem %s4594_s15, 1024  ;;  %p4596_p1 = scmp.lt.s32.totalorder %s7428_s28, %s4594_s15 }
 0x189   : > { %3769 = vrot.lane.b32.xlu0 %v3607_v61, %s4679_s8  ;;  %v7215_v25 = vpop.permute.xlu1 %2176  ;;  %v4434_v61 = vunpack.i.l.bf16 %v7191_v35  ;;  %v4450_v35 = vunpack.i.h.bf16 %v7206_v56  ;;  %p4597_p2 = scmp.lt.s32.totalorder %s4595_s16, %s4589_s14 }
 0x18b   : > { %v1437_v3 = vsel %vm637_vm5, %v1436_v54, %v4434_v61  ;;  %v1845_v27 = vsel %vm639_vm6, %v1844_v30, %v4450_v35  ;;  %v7985_v61 = vld [vmem:[#allocation24_spill] sm:$0xff]  ;;  %p4598_p3 = por %p4597_p2, %p4596_p1 }
 0x18c   : > { %v1438_v42 = vsel %vm639_vm6, %v1437_v3, %v4449_v63  ;;  %v7990_v63 = vld [vmem:[#allocation48_spill] sm:$0xff] }
 0x18d   : > { %3825 = vperm.xlu0 %4572, %v3817_v57   ;;  %v7992_v54 = vcombine.low %v7990_v63, %v7991_v44  ;;  %p4599_p5 = pnand %p4598_p3, %p4592_p0 }
 0x18f   : > { %v2231_v3 = vsel %vm631_vm2, %v7992_v54, %v7215_v25 }
 0x190   : > { %v7225_v11 = vpop.permute.xlu0 %4442  ;;  %v7227_v33 = vpop.permute.xlu1 %4457 }
 0x191   : > { %v4445_v58 = vunpack.i.h.bf16 %v7225_v11  ;;  %v4444_v37 = vunpack.i.l.bf16 %v7225_v11  ;;  %v4460_v60 = vunpack.i.h.bf16 %v7227_v33  ;;  %v4459_v41 = vunpack.i.l.bf16 %v7227_v33 }
 0x192   : > { %v7989_v11 = vcombine.low %v7987_v36, %v7988_v28 }
 0x194   : > { %v4453_v24 = vpop.permute.xlu0 %4452  ;;  %v4468_v1 = vpop.permute.xlu1 %4467  ;;  %v2628_v23 = vsel %vm631_vm2, %v7989_v11, %v4444_v37 }
 0x195   : > { %v4455_v39 = vunpack.i.h.bf16 %v4453_v24  ;;  %v4454_v38 = vunpack.i.l.bf16 %v4453_v24  ;;  %v4470_v50 = vunpack.i.h.bf16 %v4468_v1  ;;  %v4469_v19 = vunpack.i.l.bf16 %v4468_v1 }
 0x197   : > { %v1446_v22 = vsel %vm641_vm7, %v1445_v32, %v4454_v38  ;;  %v1853_v15 = vsel %vm641_vm7, %v1852_v45, %v4455_v39 }
 0x198   : > { %v2209_v34 = vpop.permute.xlu0 %2208  ;;  %v7254_v57 = vpop.permute.xlu1 %2212  ;;  %v1447_v14 = vsel %vm643_vm8, %v1446_v22, %v4469_v19  ;;  %v1854_v12 = vsel %vm643_vm8, %v1853_v15, %v4470_v50  ;;  %v7983_v22 = vcombine.low %v7981_v40, %v7982_v55 }
 0x199   : > { %v4232_v29 = vpack.c.bf16 %v1854_v12, %v1447_v14  ;;  %v7986_v14 = vcombine.low %v7984_v52, %v7985_v61 }
 0x19a   : > { %v2238_v15 = vsel %vm631_vm2, %v7983_v22, %v7200_v43 }
 0x19b   : > { %4233 = vmatprep.subr.bf16.mxu0 %v4232_v29  ;;  %v2621_v12 = vsel %vm631_vm2, %v7986_v14, %v4445_v58  ;;  %v2239_v29 = vsel %vm633_vm3, %v2238_v15, %v2209_v34 }
 0x19c   : > { %v4463_v5 = vpop.permute.xlu0 %4462  ;;  %v2622_v34 = vsel %vm633_vm3, %v2621_v12, %v4460_v60  ;;  %v7995_v12 = vld [vmem:[#allocation49_spill] sm:$0xff] }
 0x19d   : > { %v4465_v31 = vunpack.i.h.bf16 %v4463_v5  ;;  %v4464_v10 = vunpack.i.l.bf16 %v4463_v5 }
 0x19e   : > { %v4478_v0 = vpop.permute.xlu1 %4477 }
 0x19f   : > { %v4480_v48 = vunpack.i.h.bf16 %v4478_v0  ;;  %v4479_v9 = vunpack.i.l.bf16 %v4478_v0  ;;  %v1439_v56 = vsel %vm641_vm7, %v1438_v42, %v4464_v10  ;;  %v1846_v2 = vsel %vm641_vm7, %v1845_v27, %v4465_v31  ;;  %v7993_v0 = vld [vmem:[#allocation43_spill] sm:$0xff]  ;;  %v7994_v31 = vld [vmem:[#allocation40_spill] sm:$0xff] }
 0x1a0   : > { %v2181_v7 = vpop.permute.xlu0 %2180  ;;  %v2956_v10 = vcombine.low %v7994_v31, %v7993_v0 }
 0x1a1   : > { %v1440_v4 = vsel %vm643_vm8, %v1439_v56, %v4479_v9  ;;  %v1847_v53 = vsel %vm643_vm8, %v1846_v2, %v4480_v48  ;;  %v2232_v5 = vsel %vm633_vm3, %v2231_v3, %v2181_v7  ;;  %v2629_v48 = vsel %vm633_vm3, %v2628_v23, %v4459_v41 }
 0x1a2   : > { %v2217_v8 = vpop.permute.xlu1 %2216  ;;  %v4234_v49 = vpack.c.bf16 %v1847_v53, %v1440_v4  ;;  %v2240_v9 = vsel %vm635_vm4, %v2239_v29, %v7254_v57 }
 0x1a3   : > { %v2241_v27 = vsel %vm637_vm5, %v2240_v9, %v2217_v8 }
 0x1a4   : > { %4235 = vmatpush1.bf16.msra.mxu0 %v4234_v49  ;;  %v4473_v51 = vpop.permute.xlu0 %4472 }
 0x1a5   : > { %v4475_v26 = vunpack.i.h.bf16 %v4473_v51  ;;  %v4474_v13 = vunpack.i.l.bf16 %v4473_v51 }
 0x1a6   : > { %v2189_v59 = vpop.permute.xlu1 %2188 }
 0x1a7   : > { %v2623_v25 = vsel %vm635_vm4, %v2622_v34, %v4475_v26  ;;  %v2630_v56 = vsel %vm635_vm4, %v2629_v48, %v4474_v13 }
 0x1a8   : > { %v2185_v47 = vpop.permute.xlu0 %2184 }
 0x1a9   : > { %v2233_v42 = vsel %vm635_vm4, %v2232_v5, %v2185_v47 }
 0x1aa   : > { %v4488_v6 = vpop.permute.xlu1 %4487  ;;  %v2234_v57 = vsel %vm637_vm5, %v2233_v42, %v2189_v59 }
 0x1ab   : > { %v4490_v2 = vunpack.i.h.bf16 %v4488_v6  ;;  %v4489_v58 = vunpack.i.l.bf16 %v4488_v6 }
 0x1ac   : > { %v4483_v24 = vpop.permute.xlu0 %4482 }
 0x1ad   : > { %v4485_v33 = vunpack.i.h.bf16 %v4483_v24  ;;  %v4484_v30 = vunpack.i.l.bf16 %v4483_v24 }
 0x1ae   : > { %v2193_v1 = vpop.permute.xlu1 %2192 }
 0x1af   : > { %v2624_v53 = vsel %vm637_vm5, %v2623_v25, %v4485_v33  ;;  %v2631_v49 = vsel %vm637_vm5, %v2630_v56, %v4484_v30  ;;  %v2235_v8 = vsel %vm639_vm6, %v2234_v57, %v2193_v1  ;;  %v7996_v1 = vld [vmem:[#allocation8_spill] sm:$0xff] }
 0x1b0   : > { %v2221_v39 = vpop.permute.xlu0 %2220  ;;  %v2625_v55 = vsel %vm639_vm6, %v2624_v53, %v4490_v2  ;;  %v2632_v22 = vsel %vm639_vm6, %v2631_v49, %v4489_v58  ;;  %v7997_v60 = vcombine.low %v7995_v12, %v7996_v1  ;;  %v7999_v53 = vld [vmem:[#allocation65_spill] sm:$0xff] }
 0x1b1   : > { %v2242_v40 = vsel %vm639_vm6, %v2241_v27, %v2221_v39 }
 0x1b2   : > { %v4498_v38 = vpop.permute.xlu1 %4497 }
 0x1b3   : > { %v4500_v51 = vunpack.i.h.bf16 %v4498_v38  ;;  %v4499_v24 = vunpack.i.l.bf16 %v4498_v38 }
 0x1b5   : > { %v2626_v6 = vsel %vm641_vm7, %v2625_v55, %v4500_v51  ;;  %v2633_v59 = vsel %vm641_vm7, %v2632_v22, %v4499_v24  ;;  %v8000_v55 = vld [vmem:[#allocation72_spill] sm:$0xff]  ;;  %v8001_v22 = vld [vmem:[#allocation7_spill] sm:$0xff] }
 0x1b6   : > { %v7277_v19 = vpop.permute.xlu1 %4507 }
 0x1b7   : > { %v4493_v50 = vpop.permute.xlu0 %4492  ;;  %v4510_v36 = vunpack.i.h.bf16 %v7277_v19 }
 0x1b8   : > { %v4495_v37 = vunpack.i.h.bf16 %v4493_v50  ;;  %v4494_v47 = vunpack.i.l.bf16 %v4493_v50 }
 0x1ba   : > { %v2229_v45 = vpop.permute.xlu1 %2228  ;;  %v3417_v39 = vsel %vm631_vm2, %v7997_v60, %v4495_v37  ;;  %v3027_v41 = vsel %vm631_vm2, %v2956_v10, %v4494_v47 }
 0x1bb   : > { %v2225_v32 = vpop.permute.xlu0 %2224 }
 0x1bc   : > { %v2243_v15 = vsel %vm641_vm7, %v2242_v40, %v2225_v32  ;;  %v4509_v32 = vunpack.i.l.bf16 %v7277_v19  ;;  %v3418_v19 = vsel %vm633_vm3, %v3417_v39, %v4510_v36 }
 0x1bd   : > { %v7336_v28 = vsel %vm643_vm8, %v2243_v15, %v2229_v45  ;;  %v8002_v15 = vcombine.low %v8000_v55, %v8001_v22 }
 0x1be   : > { %v7299_v43 = vpop.permute.xlu1 %4517  ;;  %v3028_v45 = vsel %vm633_vm3, %v3027_v41, %v4509_v32 }
 0x1bf   : > { %v7297_v35 = vpop.permute.xlu0 %4502  ;;  %v4520_v47 = vunpack.i.h.bf16 %v7299_v43 }
 0x1c0   : > { %v4505_v56 = vunpack.i.h.bf16 %v7297_v35  ;;  %v4504_v51 = vunpack.i.l.bf16 %v7297_v35 }
 0x1c2   : > { %v2201_v4 = vpop.permute.xlu1 %2200 }
 0x1c3   : > { %v2197_v7 = vpop.permute.xlu0 %2196 }
 0x1c4   : > { %v2236_v52 = vsel %vm641_vm7, %v2235_v8, %v2197_v7 }
 0x1c5   : > { %v7339_v11 = vsel %vm643_vm8, %v2236_v52, %v2201_v4  ;;  %v7998_v4 = vld [vmem:[#allocation31_spill] sm:$0xff]  ;;  %v3410_v52 = vsel %vm631_vm2, %v8002_v15, %v4505_v56 }
 0x1c6   : > { %v4533_v14 = vpop.permute.xlu1 %4532  ;;  %v2820_v49 = vcombine.low %v7999_v53, %v7998_v4  ;;  %v3411_v32 = vsel %vm633_vm3, %v3410_v52, %v4520_v47 }
 0x1c7   : > { %v4513_v61 = vpop.permute.xlu0 %4512  ;;  %v4535_v33 = vunpack.i.h.bf16 %v4533_v14  ;;  %v4534_v30 = vunpack.i.l.bf16 %v4533_v14 }
 0x1c8   : > { %v4515_v38 = vunpack.i.h.bf16 %v4513_v61  ;;  %v4514_v50 = vunpack.i.l.bf16 %v4513_v61  ;;  %v4519_v61 = vunpack.i.l.bf16 %v7299_v43 }
 0x1ca   : > { %v2634_v23 = vsel %vm643_vm8, %v2633_v59, %v4514_v50  ;;  %v2627_v29 = vsel %vm643_vm8, %v2626_v6, %v4515_v38  ;;  %v4543_v13 = vpop.permute.xlu1 %4542  ;;  %v3020_v6 = vsel %vm631_vm2, %v2820_v49, %v4504_v51 }
 0x1cb   : > { %v4523_v26 = vpop.permute.xlu0 %4522  ;;  %v4236_v63 = vpack.c.bf16 %v2634_v23, %v7336_v28  ;;  %v4238_v44 = vpack.c.bf16 %v2627_v29, %v7339_v11  ;;  %v4545_v9 = vunpack.i.h.bf16 %v4543_v13  ;;  %v4544_v42 = vunpack.i.l.bf16 %v4543_v13 }
 0x1cc   : > { %v4525_v54 = vunpack.i.h.bf16 %v4523_v26  ;;  %v4524_v3 = vunpack.i.l.bf16 %v4523_v26  ;;  %v3021_v43 = vsel %vm633_vm3, %v3020_v6, %v4519_v61  ;;  %v3814_v61 = vld [vmem:[%s7483_s1] sm:$0xff] }
 0x1cd   : > { %4237 = vmatprep.subr.bf16.mxu0 %v4236_v63 }
 0x1ce   : > { %v3029_v5 = vsel %vm635_vm4, %v3028_v45, %v4524_v3  ;;  %v3419_v0 = vsel %vm635_vm4, %v3418_v19, %v4525_v54  ;;  %4239 = vmatpush1.bf16.msra.mxu0 %v4238_v44  ;;  %v4553_v48 = vpop.permute.xlu1 %4552 }
 0x1cf   : > { %v3030_v31 = vsel %vm637_vm5, %v3029_v5, %v4534_v30  ;;  %v3420_v10 = vsel %vm637_vm5, %v3419_v0, %v4535_v33  ;;  %v4528_v34 = vpop.permute.xlu0 %4527  ;;  %v4555_v27 = vunpack.i.h.bf16 %v4553_v48  ;;  %v4554_v25 = vunpack.i.l.bf16 %v4553_v48 }
 0x1d0   : > { %v3031_v2 = vsel %vm639_vm6, %v3030_v31, %v4544_v42  ;;  %v3421_v7 = vsel %vm639_vm6, %v3420_v10, %v4545_v9  ;;  %v4530_v59 = vunpack.i.h.bf16 %v4528_v34  ;;  %v4529_v38 = vunpack.i.l.bf16 %v4528_v34 }
 0x1d1   : > { %v3032_v8 = vsel %vm641_vm7, %v3031_v2, %v4554_v25  ;;  %v3422_v40 = vsel %vm641_vm7, %v3421_v7, %v4555_v27 }
 0x1d2   : > { %v4563_v58 = vpop.permute.xlu1 %4562  ;;  %v3022_v23 = vsel %vm635_vm4, %v3021_v43, %v4529_v38  ;;  %v3412_v29 = vsel %vm635_vm4, %v3411_v32, %v4530_v59 }
 0x1d3   : > { %v4538_v24 = vpop.permute.xlu0 %4537  ;;  %v4565_v57 = vunpack.i.h.bf16 %v4563_v58  ;;  %v4564_v37 = vunpack.i.l.bf16 %v4563_v58 }
 0x1d4   : > { %v4540_v60 = vunpack.i.h.bf16 %v4538_v24  ;;  %v4539_v39 = vunpack.i.l.bf16 %v4538_v24 }
 0x1d5   : > { %v3033_v14 = vsel %vm643_vm8, %v3032_v8, %v4564_v37  ;;  %v3423_v35 = vsel %vm643_vm8, %v3422_v40, %v4565_v57 }
 0x1d6   : > { %v4568_v12 = vpop.permute.xlu1 %4567  ;;  %v4240_v1 = vpack.c.bf16 %v3423_v35, %v3033_v14  ;;  %v3023_v63 = vsel %vm637_vm5, %v3022_v23, %v4539_v39  ;;  %v3413_v44 = vsel %vm637_vm5, %v3412_v29, %v4540_v60  ;;  %v3916_v29 = vld [vmem:[%s7485_s3] sm:$0xff] }
 0x1d7   : > { %v4548_v50 = vpop.permute.xlu0 %4547  ;;  %v4570_v33 = vunpack.i.h.bf16 %v4568_v12  ;;  %v4569_v30 = vunpack.i.l.bf16 %v4568_v12 }
 0x1d8   : > { %v4550_v41 = vunpack.i.h.bf16 %v4548_v50  ;;  %v4549_v36 = vunpack.i.l.bf16 %v4548_v50  ;;  %4241 = vmatprep.subr.bf16.mxu0 %v4240_v1 }
 0x1da   : > { %v3778_v13 = vpop.permute.xlu1 %3777  ;;  %v3024_v19 = vsel %vm639_vm6, %v3023_v63, %v4549_v36  ;;  %v3414_v45 = vsel %vm639_vm6, %v3413_v44, %v4550_v41 }
 0x1db   : > { %v4558_v26 = vpop.permute.xlu0 %4557 }
 0x1dc   : > { %v4560_v54 = vunpack.i.h.bf16 %v4558_v26  ;;  %v4559_v3 = vunpack.i.l.bf16 %v4558_v26  ;;  %v3917_v26 = vld [vmem:[%s7485_s3 + $0x8] sm:$0xff] }
 0x1de   : > { %v3025_v5 = vsel %vm641_vm7, %v3024_v19, %v4559_v3  ;;  %v3415_v0 = vsel %vm641_vm7, %v3414_v45, %v4560_v54  ;;  %v3782_v10 = vpop.permute.xlu1 %3781 }
 0x1df   : > { %v3774_v31 = vpop.permute.xlu0 %3773  ;;  %v3026_v34 = vsel %vm643_vm8, %v3025_v5, %v4569_v30  ;;  %v3416_v48 = vsel %vm643_vm8, %v3415_v0, %v4570_v33 }
 0x1e0   : > { %v4242_v9 = vpack.c.bf16 %v3416_v48, %v3026_v34  ;;  %v3807_v25 = vsel %vm631_vm2, %v3736_v18, %v3774_v31 }
 0x1e1   : > { %v3808_v56 = vsel %vm633_vm3, %v3807_v25, %v3778_v13  ;;  %v4013_v13 = vld [vmem:[%s7486_s4] sm:$0xff] }
 0x1e2   : > { %4243 = vmatpush1.bf16.msra.mxu0 %v4242_v9  ;;  %v3786_v27 = vpop.permute.xlu1 %3785  ;;  %v3809_v4 = vsel %vm635_vm4, %v3808_v56, %v3782_v10 }
 0x1e3   : > { %v3746_v42 = vpop.permute.xlu0 %3745  ;;  %v3810_v51 = vsel %vm637_vm5, %v3809_v4, %v3786_v27 }
 0x1e4   : > { %v3800_v18 = vsel %vm631_vm2, %v3600_v20, %v3746_v42 }
 0x1e6   : > { %v3790_v7 = vpop.permute.xlu1 %3789 }
 0x1e7   : > { %v3750_v2 = vpop.permute.xlu0 %3749  ;;  %v3811_v24 = vsel %vm639_vm6, %v3810_v51, %v3790_v7 }
 0x1e8   : > { %v3801_v47 = vsel %vm633_vm3, %v3800_v18, %v3750_v2 }
 0x1ea   : > { %v3794_v49 = vpop.permute.xlu1 %3793 }
 0x1eb   : > { %v3754_v53 = vpop.permute.xlu0 %3753  ;;  %v3812_v58 = vsel %vm641_vm7, %v3811_v24, %v3794_v49 }
 0x1ec   : > { %v3802_v40 = vsel %vm635_vm4, %v3801_v47, %v3754_v53 }
 0x1ee   : > { %v3798_v37 = vpop.permute.xlu1 %3797 }
 0x1ef   : > { %v3758_v57 = vpop.permute.xlu0 %3757  ;;  %v3813_v62 = vsel %vm643_vm8, %v3812_v58, %v3798_v37 }
 0x1f0   : > { %3851 = vmatprep.subr.mxu0 %v3813_v62  ;;  %v3803_v55 = vsel %vm637_vm5, %v3802_v40, %v3758_v57 }
 0x1f3   : > { %v3762_v21 = vpop.permute.xlu0 %3761 }
 0x1f4   : > { %v3804_v22 = vsel %vm639_vm6, %v3803_v55, %v3762_v21 }
 0x1f7   : > { %v3766_v8 = vpop.permute.xlu0 %3765 }
 0x1f8   : > { %v3805_v15 = vsel %vm641_vm7, %v3804_v22, %v3766_v8 }
 0x1fb   : > { %v3770_v52 = vpop.permute.xlu0 %3769 }
 0x1fc   : > { %v3806_v16 = vsel %vm643_vm8, %v3805_v15, %v3770_v52 }
 0x1fd   : > { %3852 = vmatpush1.msra.mxu0 %v3806_v16 }
 0x1fe   : > { %4216 = vmatmul.mubr.msk.f32.vlgmr.msra.gmra.mrb[0].mxu0 %vm3828_vm9, %v3814_v61 }
 0x1ff   : > { %3905 = vmatprep.mubr.f32.mxu0 %v4680_v46  ;;  %v3821_v35 = vpop.permute.xlu1 %3820 }
 0x202   : > { %4217 = vmatmul.mubr.msk.f32.gmra.mrb[2].mxu0 %vm3828_vm9, %v3815_v17 }
 0x20c   : > { %v3826_v6 = vpop.permute.xlu0 %3825 }
 0x2d1   : > { %v3901_v20 = vpop.f32.mrb[0].mxu0 }
 0x2d2   : > { %v3903_v14 = vpop.f32.mrb[1].mxu0  ;;  %v3902_v59 = vadd.f32 %v3901_v20, %v3821_v35 }
 0x2d3   : > { %v3904_v38 = vadd.f32 %v3903_v14, %v3821_v35 }
 0x2d4   : > { %v3912_v39 = vmax.f32 %v3902_v59, 0.0 }
 0x2d5   : > { %v3907_v50 = vpop.f32.mrb[2].mxu0  ;;  %v3913_v36 = vmax.f32 %v3904_v38, 0.0 }
 0x2d6   : > { %v3908_v12 = vadd.f32 %v3907_v50, %v3826_v6  ;;  %v3909_v1 = vpop.f32.mrb[3].mxu0 }
 0x2d7   : > { %v3910_v60 = vadd.f32 %v3909_v1, %v3826_v6 }
 0x2d8   : > { %v3914_v41 = vmax.f32 %v3908_v12, 0.0 }
 0x2d9   : > { %v3915_v32 = vmax.f32 %v3910_v60, 0.0 }
 0x2da   : > { %v4246_v43 = vpack.c.bf16 %v3914_v41, %v3912_v39 }
 0x2db   : > { %v4244_v23 = vpack.c.bf16 %v3915_v32, %v3913_v36 }
 0x2dd   : > { %4245 = vmatprep.subr.bf16.mxu1 %v4244_v23 }
 0x2de   : > { %4247 = vmatpush1.bf16.msra.mxu1 %v4246_v43 }
 0x2df   : > { %4022 = vmatprep.subr.mxu1 %v7336_v28  ;;  %v4014_v28 = vld [vmem:[%s7486_s4 + $0x8] sm:$0xff] }
 0x2e1   : > { %4218 = vmatmul.mubr.msk.f32.vlgmr.msra.gmra.mrb[0].mxu1 %vm631_vm2, %v3916_v29 }
 0x2e2   : > { %4023 = vmatpush1.msra.mxu1 %v7339_v11  ;;  %4006 = vmatprep.mubr.f32.mxu1 %v4680_v46  ;;  %v3923_v11 = vpop.permute.xlu1 %3922 }
 0x2e5   : > { %4219 = vmatmul.mubr.msk.f32.gmra.mrb[2].mxu1 %vm631_vm2, %v3917_v26 }
 0x2e6   : > { %4086 = vmatprep.mubr.f32.mxu1 %v4680_v46  ;;  %v3928_v45 = vpop.permute.xlu1 %3927 }
 0x2e9   : > { %4220 = vmatmul.mubr.msk.f32.vlgmr.msra.gmra.mrb[0].mxu1 %vm4015_vm10, %v4013_v13 }
 0x2ea   : > { %4092 = vmatprep.mubr.f32.mxu1 %v4680_v46 }
 0x2ed   : > { %4221 = vmatmul.mubr.msk.f32.gmra.mrb[2].mxu1 %vm4015_vm10, %v4014_v28 }
 0x3bc   : > { %v4088_v63 = vpop.f32.mrb[0].mxu1 }
 0x3bd   : > { %v4248_v44 = vadd.f32 %v4088_v63, %v3923_v11  ;;  %v4090_v54 = vpop.f32.mrb[1].mxu1 }
 0x3be   : > { %v4249_v3 = vadd.f32 %v4090_v54, %v3923_v11 }
 0x3bf   : > { %v4103_v19 = vmax.f32 %v4248_v44, 0.0 }
 0x3c0   : > { %v4104_v33 = vmax.f32 %v4249_v3, 0.0  ;;  %v4094_v30 = vpop.f32.mrb[2].mxu1 }
 0x3c1   : > { %4107 = vst [vmem:[%s268_s27] sm:$0xff] %v4103_v19  ;;  %v4250_v46 = vadd.f32 %v4094_v30, %v3928_v45  ;;  %v4096_v5 = vpop.f32.mrb[3].mxu1 }
 0x3c2   : > { %4108 = vst [vmem:[%s268_s27 + $0x8] sm:$0xff] %v4104_v33  ;;  %v4251_v0 = vadd.f32 %v4096_v5, %v3928_v45 }
 0x3c3   : > { %v4105_v31 = vmax.f32 %v4250_v46, 0.0 }
 0x3c4   : > { %v4106_v10 = vmax.f32 %v4251_v0, 0.0 }
 0x3c5   : > { %4109 = vst [vmem:[%s268_s27 + $0x10] sm:$0xff] %v4105_v31 }
 0x3c6   : > { %4110 = vst [vmem:[%s268_s27 + $0x18] sm:$0xff] %v4106_v10 }
 0x3c7   : > { %4602 = shalt.err (!%p4599_p5)
}
 0x3c8   : > { %s4603_s17 = scalar_lea.hbm %s7433_s12, 512  ;;  %s4607_s27 = scalar_lea.hbm %s7488_s6, 1024 }
 0x3c9   : > { %p4604_p6 = scmp.ne.s32.totalorder %s7433_s12, %s4603_s17  ;;  %p4608_p10 = scmp.lt.u32.totalorder %s7433_s12, %s7488_s6 }
 0x3ca   : > { %p4609_p11 = scmp.lt.u32.totalorder %s4607_s27, %s4603_s17  ;;  %p4611_p13 = scmp.lt.u32.totalorder %s4603_s17, %s7433_s12 }
 0x3cb   : > { %p4605_p7 = pnand %p4604_p6, %p4759_p4 }
 0x3cc   : > { %p4610_p12 = por %p4609_p11, %p4608_p10 }
 0x3cd   : > { %p4606_p9 = pneg %p4605_p7 }
 0x3ce   : > { %p4612_p0 = por %p4611_p13, %p4610_p12 }
 0x3d0   : > { %p4613_p1 = pnand %p4612_p0, %p4606_p9 }
 0x3d2   : > { %4616 = shalt.err (!%p4613_p1)
}
 0x3d3   : > { %s4683_s11 = smov 256  }
 0x3d4   : > { %4257 = dma.vmem_to_hbm [thread:$0]  (%p4759_p4), %s7428_s28, 512, %s7433_s12, %s7435_s13, %s4683_s11, %s4683_s11, %s4673_s18  }
 0x3d5 PF: > { %p4263_p2 = scmp.ge.s32.totalorder %s4667_s26, 2  ;;  %s4142_s14 = sand.u32 1, %s4647_s21  }
 0x3d6   : > { %s4143_s24 = scalar_lea.sflag [#allocation3], %s4142_s14 }
 0x3d7   : > { %p4260_p3 = pnand %p4263_p2, %p4766_p8 }
 0x3d9   : > { %4642 = dma.done.wait (!%p4260_p3), %s4143_s24, 512  }
 0x3da   : > { %4644 = vsyncadd (!%p4260_p3), %s4143_s24, 4294966784  ;;  %s19_s26 = sadd.s32 1, %s4667_s26   ;;  %s8003_s21 = smov %s4651_s22 }
 0x3db   : > { %p16_p5 = scmp.ge.s32.totalorder %s19_s26, 4   ;;  %s8004_s22 = smov %s4655_s23 }
 0x3dc   : > { %s8005_s23 = smov %s4772_s10  ;;  %s8006_s24 = smov %s4663_s25 }
 0x3dd   : > { %s8007_s25 = smov %s8009_s29  ;;  %18 = sbr.rel (!%p16_p5) target bundleno = 4 (0x4), region = 79 }
 0x3e4   :  { %4148 = vsyncpa [#allocation3], 1 }
 0x3e5   :  { %4150 = vsyncpa [#allocation3 + $0x1], 1 }

</bundles_post_ra>
